<compile_context>
chip_gen: v7x
topology: tpu7x:2x2x1
jax: 0.10.0
libtpu: 0.0.40
codegen_flags: <defaults>
</compile_context>

<pallas_src>
import functools

import jax
import jax.numpy as jnp
from jax import lax
from jax.experimental import pallas as pl
from jax.experimental.pallas import tpu as pltpu


def _ru(v, m):
    return ((v + m - 1) // m) * m


def _dot_f32x3(a, b):
    """f32-accurate matmul out of bf16-safe MXU passes.

    Each f32 operand is split into a bf16-exact high part plus a small residual;
    the three dominant cross terms reproduce the f32 product to ~2^-16 relative
    even if the backend truncates f32 matmul inputs to bf16 (better if it does
    not).  All passes are lane-dense MXU matmuls with f32 accumulation.
    """
    f32 = jnp.float32
    ah = a.astype(jnp.bfloat16).astype(f32)
    al = a - ah
    bh = b.astype(jnp.bfloat16).astype(f32)
    bl = b - bh
    d = lambda u, v: jnp.dot(u, v, preferred_element_type=f32)
    return d(ah, bh) + d(al, bh) + d(ah, bl)


def _upblock_kernel(xdil_ref, crop_ref, wd_ref, bd_ref, w1_ref, b1_ref,
                    w2_ref, b2_ref, o_ref, *, row_stride, l1, l2):
    # Slab layout: lane index p = n*(2H*2W) + a*(2W) + b  (row-major per image).
    # A 3x3 tap (ki, kj) of any slab is the static lane-shifted slice
    # [t : t + L] with t = ki*row_stride + kj; VALID output pixels never read
    # across an image seam, so the "wrong" lanes only feed positions that the
    # wrapper crops away.
    offs = [ki * row_stride + kj for ki in range(3) for kj in range(3)]

    # ConvTranspose2d(k=2, s=2): one real matmul against the zero-dilated x slab
    # (the depth-to-space scatter was folded into the input layout).
    up = _dot_f32x3(wd_ref[...], xdil_ref[...]) + bd_ref[...]          # (Cp, LS)
    z = jnp.concatenate([up, crop_ref[...]], axis=0)                   # (2Cp, LS) == concat([up, crop], dim=1)

    # conv1 (3x3 VALID) + ReLU as a single im2col matmul on the MXU.
    p1 = jnp.concatenate([z[:, t:t + l1] for t in offs], axis=0)       # (9*2Cp, L1)
    h = jnp.maximum(_dot_f32x3(w1_ref[...], p1) + b1_ref[...], 0.0)    # (Cp, L1)

    # conv2 (3x3 VALID) + ReLU.
    p2 = jnp.concatenate([h[:, t:t + l2] for t in offs], axis=0)       # (9*Cp, L2)
    out = jnp.maximum(_dot_f32x3(w2_ref[...], p2) + b2_ref[...], 0.0)  # (Cp, L2)
    o_ref[...] = out.astype(o_ref.dtype)


def up_block_forward(x, crop, params):
    """x: (N, Cin, H, W) NCHW, crop: (N, Cout, 2H, 2W) NCHW -> (N, Cout, 2H-4, 2W-4)."""
    wd, bd, w1, b1, w2, b2 = (params[k] for k in ("wd", "bd", "w1", "b1", "w2", "b2"))
    f32 = jnp.float32
    wd, bd, w1, b1, w2, b2 = (a.astype(f32) for a in (wd, bd, w1, b1, w2, b2))

    N, Cin, H, W = x.shape
    Cout = wd.shape[1]
    H2, W2 = 2 * H, 2 * W
    Ho, Wo = H2 - 4, W2 - 4
    G = H2 * W2                        # pixels per image on the upsampled grid
    L2 = N * G                         # conv2 output slab length (covers all valid lanes)
    L1 = _ru(L2 + 2 * W2 + 2, 128)     # conv1 output slab length
    LS = _ru(L1 + 2 * W2 + 2, 128)     # z slab length (lane-aligned)
    Cp = max(_ru(Cout, 8), 8)          # sublane-padded channel count
    Kd = max(_ru(Cin * 4, 8), 8)       # deconv contraction depth (padded)

    # ---------- wrapper-side layout plumbing (no FLOPs) ----------------------
    # Zero-dilated x: row (c*4 + p*2 + q) holds x[:, c] scattered to the
    # (2i+p, 2j+q) positions of the (2H, 2W) grid; all other lanes are zero.
    xt = x.astype(f32).transpose(1, 0, 2, 3)                           # (Cin, N, H, W)
    xd = jnp.zeros((Cin, 2, 2, N, H2, W2), f32)
    for p in range(2):
        for q in range(2):
            xd = xd.at[:, p, q, :, p::2, q::2].set(xt)
    x_slab = jnp.zeros((Kd, LS), f32).at[:Cin * 4, :L2].set(xd.reshape(Cin * 4, L2))

    crop_slab = jnp.zeros((Cp, LS), f32).at[:Cout, :L2].set(
        crop.astype(f32).transpose(1, 0, 2, 3).reshape(Cout, L2))

    # Weight matrices for the matmuls (channel dims zero-padded to Cp / Kd).
    wdm = jnp.zeros((Cp, Kd), f32).at[:Cout, :Cin * 4].set(
        wd.transpose(1, 0, 2, 3).reshape(Cout, Cin * 4))               # [o, c*4+p*2+q]

    w1_pad = jnp.zeros((Cp, 2 * Cp, 3, 3), f32)
    w1_pad = w1_pad.at[:Cout, :Cout].set(w1[:, :Cout])                 # "up" half
    w1_pad = w1_pad.at[:Cout, Cp:Cp + Cout].set(w1[:, Cout:])          # "crop" half
    w1m = w1_pad.transpose(0, 2, 3, 1).reshape(Cp, 9 * 2 * Cp)         # [o, tap*2Cp + c]

    w2_pad = jnp.zeros((Cp, Cp, 3, 3), f32).at[:Cout, :Cout].set(w2)
    w2m = w2_pad.transpose(0, 2, 3, 1).reshape(Cp, 9 * Cp)             # [o, tap*Cp + c]

    bdc = jnp.zeros((Cp, 1), f32).at[:Cout, 0].set(bd)
    b1c = jnp.zeros((Cp, 1), f32).at[:Cout, 0].set(b1)
    b2c = jnp.zeros((Cp, 1), f32).at[:Cout, 0].set(b2)

    # ---------- one fused kernel invocation (no grid) -------------------------
    kernel = functools.partial(_upblock_kernel, row_stride=W2, l1=L1, l2=L2)
    vmem = pltpu.MemorySpace.VMEM
    slab = pl.pallas_call(
        kernel,
        out_shape=jax.ShapeDtypeStruct((Cp, L2), f32),
        in_specs=[pl.BlockSpec(memory_space=vmem)] * 8,
        out_specs=pl.BlockSpec(memory_space=vmem),
    )(x_slab, crop_slab, wdm, bdc, w1m, b1c, w2m, b2c)

    # De-sparsify: valid conv2 outputs live at lanes n*G + r*2W + s with r,s < 2H-4.
    out = slab[:Cout].reshape(Cout, N, H2, W2).transpose(1, 0, 2, 3)[:, :, :Ho, :Wo]
    return out


def _reference(x, crop, params):
    """Pure-JAX reference with identical PyTorch semantics (NCHW, f32-exact)."""
    wd, bd, w1, b1, w2, b2 = (params[k] for k in ("wd", "bd", "w1", "b1", "w2", "b2"))
    N, Cin, H, W = x.shape
    Cout = wd.shape[1]
    hi = jax.lax.Precision.HIGHEST
    # ConvTranspose2d(k=2, s=2): out[n, o, 2i+p, 2j+q] = sum_c x[n,c,i,j]*wd[c,o,p,q] + bd[o]
    t = jnp.einsum("ncij,copq->noipjq", x, wd, precision=hi)
    up = t.reshape(N, Cout, 2 * H, 2 * W) + bd[None, :, None, None]
    z = jnp.concatenate([up, crop], axis=1)
    dn = ("NCHW", "OIHW", "NCHW")
    h = lax.conv_general_dilated(z, w1, (1, 1), "VALID", dimension_numbers=dn,
                                 precision=hi) + b1[None, :, None, None]
    h = jnp.maximum(h, 0.0)
    o = lax.conv_general_dilated(h, w2, (1, 1), "VALID", dimension_numbers=dn,
                                 precision=hi) + b2[None, :, None, None]
    return jnp.maximum(o, 0.0)


if __name__ == "__main__":
    key = jax.random.PRNGKey(0)
    in_channels, out_channels = 4, 4
    N, H, W = 2, 8, 8
    ks = jax.random.split(key, 8)

    x = jax.random.normal(ks[0], (N, in_channels, H, W), jnp.float32)
    crop = jax.random.normal(ks[1], (N, out_channels, 2 * H, 2 * W), jnp.float32)

    # deterministic synthetic parameters (shapes from UpBlock.__init__)
    params = dict(
        wd=0.2 * jax.random.normal(ks[2], (in_channels, out_channels, 2, 2), jnp.float32),
        bd=0.1 * jax.random.normal(ks[3], (out_channels,), jnp.float32),
        w1=0.2 * jax.random.normal(ks[4], (out_channels, 2 * out_channels, 3, 3), jnp.float32),
        b1=0.1 * jax.random.normal(ks[5], (out_channels,), jnp.float32),
        w2=0.2 * jax.random.normal(ks[6], (out_channels, out_channels, 3, 3), jnp.float32),
        b2=0.1 * jax.random.normal(ks[7], (out_channels,), jnp.float32),
    )

    out = jax.jit(up_block_forward)(x, crop, params)
    out = jax.block_until_ready(out)

    ref = _reference(x, crop, params)
    assert out.shape == (N, out_channels, 2 * H - 4, 2 * W - 4), out.shape
    max_err = float(jnp.max(jnp.abs(out - ref)))
    assert jnp.allclose(out, ref, atol=5e-4, rtol=5e-4), f"max_err={max_err}"
    print("KERNEL_OK")
</pallas_src>

<mosaic_0001>
module attributes {stable_mosaic.version = 11 : i64} {
  func.func @_upblock_kernel(%arg0: memref<16x768xf32, #tpu.memory_space<vmem>>, %arg1: memref<8x768xf32, #tpu.memory_space<vmem>>, %arg2: memref<8x16xf32, #tpu.memory_space<vmem>>, %arg3: memref<8x1xf32, #tpu.memory_space<vmem>>, %arg4: memref<8x144xf32, #tpu.memory_space<vmem>>, %arg5: memref<8x1xf32, #tpu.memory_space<vmem>>, %arg6: memref<8x72xf32, #tpu.memory_space<vmem>>, %arg7: memref<8x1xf32, #tpu.memory_space<vmem>>, %arg8: memref<8x512xf32, #tpu.memory_space<vmem>>) attributes {dimension_semantics = [], scalar_prefetch = 0 : i64, scratch_operands = 0 : i64, tpu.core_type = #tpu.core_type<tc>} {
    %c0 = arith.constant 0 : index
    %c0_0 = arith.constant 0 : index
    %0 = vector.load %arg2[%c0, %c0_0] : memref<8x16xf32, #tpu.memory_space<vmem>>, vector<8x16xf32>
    %c0_1 = arith.constant 0 : index
    %c0_2 = arith.constant 0 : index
    %1 = vector.load %arg0[%c0_1, %c0_2] : memref<16x768xf32, #tpu.memory_space<vmem>>, vector<16x768xf32>
    %2 = arith.truncf %0 : vector<8x16xf32> to vector<8x16xbf16>
    %3 = arith.extf %2 : vector<8x16xbf16> to vector<8x16xf32>
    %4 = arith.subf %0, %3 : vector<8x16xf32>
    %5 = arith.truncf %1 : vector<16x768xf32> to vector<16x768xbf16>
    %6 = arith.extf %5 : vector<16x768xbf16> to vector<16x768xf32>
    %7 = arith.subf %1, %6 : vector<16x768xf32>
    %cst = arith.constant dense<0.000000e+00> : vector<8x768xf32>
    %8 = tpu.matmul %3, %6, %cst {dimension_numbers = #tpu.dot_dimension_numbers<[1], [0], [0], [1], [0, 0, 1, 1], [], []>} : vector<8x16xf32>, vector<16x768xf32>, vector<8x768xf32> -> vector<8x768xf32>
    %cst_3 = arith.constant dense<0.000000e+00> : vector<8x768xf32>
    %9 = tpu.matmul %4, %6, %cst_3 {dimension_numbers = #tpu.dot_dimension_numbers<[1], [0], [0], [1], [0, 0, 1, 1], [], []>} : vector<8x16xf32>, vector<16x768xf32>, vector<8x768xf32> -> vector<8x768xf32>
    %10 = arith.addf %8, %9 : vector<8x768xf32>
    %cst_4 = arith.constant dense<0.000000e+00> : vector<8x768xf32>
    %11 = tpu.matmul %3, %7, %cst_4 {dimension_numbers = #tpu.dot_dimension_numbers<[1], [0], [0], [1], [0, 0, 1, 1], [], []>} : vector<8x16xf32>, vector<16x768xf32>, vector<8x768xf32> -> vector<8x768xf32>
    %12 = arith.addf %10, %11 : vector<8x768xf32>
    %c0_5 = arith.constant 0 : index
    %c0_6 = arith.constant 0 : index
    %13 = vector.load %arg3[%c0_5, %c0_6] : memref<8x1xf32, #tpu.memory_space<vmem>>, vector<8x1xf32>
    %14 = vector.broadcast %13 : vector<8x1xf32> to vector<8x768xf32>
    %15 = arith.addf %12, %14 : vector<8x768xf32>
    %c0_7 = arith.constant 0 : index
    %c0_8 = arith.constant 0 : index
    %16 = vector.load %arg1[%c0_7, %c0_8] : memref<8x768xf32, #tpu.memory_space<vmem>>, vector<8x768xf32>
    %17 = tpu.concatenate %15, %16 in 0 : vector<8x768xf32>, vector<8x768xf32> -> vector<16x768xf32>
    %18 = vector.extract_strided_slice %17 {offsets = [0, 0], sizes = [16, 640], strides = [1, 1]} : vector<16x768xf32> to vector<16x640xf32>
    %19 = vector.extract_strided_slice %17 {offsets = [0, 1], sizes = [16, 640], strides = [1, 1]} : vector<16x768xf32> to vector<16x640xf32>
    %20 = vector.extract_strided_slice %17 {offsets = [0, 2], sizes = [16, 640], strides = [1, 1]} : vector<16x768xf32> to vector<16x640xf32>
    %21 = vector.extract_strided_slice %17 {offsets = [0, 16], sizes = [16, 640], strides = [1, 1]} : vector<16x768xf32> to vector<16x640xf32>
    %22 = vector.extract_strided_slice %17 {offsets = [0, 17], sizes = [16, 640], strides = [1, 1]} : vector<16x768xf32> to vector<16x640xf32>
    %23 = vector.extract_strided_slice %17 {offsets = [0, 18], sizes = [16, 640], strides = [1, 1]} : vector<16x768xf32> to vector<16x640xf32>
    %24 = vector.extract_strided_slice %17 {offsets = [0, 32], sizes = [16, 640], strides = [1, 1]} : vector<16x768xf32> to vector<16x640xf32>
    %25 = vector.extract_strided_slice %17 {offsets = [0, 33], sizes = [16, 640], strides = [1, 1]} : vector<16x768xf32> to vector<16x640xf32>
    %26 = vector.extract_strided_slice %17 {offsets = [0, 34], sizes = [16, 640], strides = [1, 1]} : vector<16x768xf32> to vector<16x640xf32>
    %27 = tpu.concatenate %18, %19, %20, %21, %22, %23, %24, %25, %26 in 0 : vector<16x640xf32>, vector<16x640xf32>, vector<16x640xf32>, vector<16x640xf32>, vector<16x640xf32>, vector<16x640xf32>, vector<16x640xf32>, vector<16x640xf32>, vector<16x640xf32> -> vector<144x640xf32>
    %c0_9 = arith.constant 0 : index
    %c0_10 = arith.constant 0 : index
    %28 = vector.load %arg4[%c0_9, %c0_10] : memref<8x144xf32, #tpu.memory_space<vmem>>, vector<8x144xf32>
    %29 = arith.truncf %28 : vector<8x144xf32> to vector<8x144xbf16>
    %30 = arith.extf %29 : vector<8x144xbf16> to vector<8x144xf32>
    %31 = arith.subf %28, %30 : vector<8x144xf32>
    %32 = arith.truncf %27 : vector<144x640xf32> to vector<144x640xbf16>
    %33 = arith.extf %32 : vector<144x640xbf16> to vector<144x640xf32>
    %34 = arith.subf %27, %33 : vector<144x640xf32>
    %cst_11 = arith.constant dense<0.000000e+00> : vector<8x640xf32>
    %35 = tpu.matmul %30, %33, %cst_11 {dimension_numbers = #tpu.dot_dimension_numbers<[1], [0], [0], [1], [0, 0, 1, 1], [], []>} : vector<8x144xf32>, vector<144x640xf32>, vector<8x640xf32> -> vector<8x640xf32>
    %cst_12 = arith.constant dense<0.000000e+00> : vector<8x640xf32>
    %36 = tpu.matmul %31, %33, %cst_12 {dimension_numbers = #tpu.dot_dimension_numbers<[1], [0], [0], [1], [0, 0, 1, 1], [], []>} : vector<8x144xf32>, vector<144x640xf32>, vector<8x640xf32> -> vector<8x640xf32>
    %37 = arith.addf %35, %36 : vector<8x640xf32>
    %cst_13 = arith.constant dense<0.000000e+00> : vector<8x640xf32>
    %38 = tpu.matmul %30, %34, %cst_13 {dimension_numbers = #tpu.dot_dimension_numbers<[1], [0], [0], [1], [0, 0, 1, 1], [], []>} : vector<8x144xf32>, vector<144x640xf32>, vector<8x640xf32> -> vector<8x640xf32>
    %39 = arith.addf %37, %38 : vector<8x640xf32>
    %c0_14 = arith.constant 0 : index
    %c0_15 = arith.constant 0 : index
    %40 = vector.load %arg5[%c0_14, %c0_15] : memref<8x1xf32, #tpu.memory_space<vmem>>, vector<8x1xf32>
    %41 = vector.broadcast %40 : vector<8x1xf32> to vector<8x640xf32>
    %42 = arith.addf %39, %41 : vector<8x640xf32>
    %cst_16 = arith.constant 0.000000e+00 : f32
    %43 = vector.broadcast %cst_16 : f32 to vector<8x640xf32>
    %44 = arith.maximumf %42, %43 : vector<8x640xf32>
    %45 = vector.extract_strided_slice %44 {offsets = [0, 0], sizes = [8, 512], strides = [1, 1]} : vector<8x640xf32> to vector<8x512xf32>
    %46 = vector.extract_strided_slice %44 {offsets = [0, 1], sizes = [8, 512], strides = [1, 1]} : vector<8x640xf32> to vector<8x512xf32>
    %47 = vector.extract_strided_slice %44 {offsets = [0, 2], sizes = [8, 512], strides = [1, 1]} : vector<8x640xf32> to vector<8x512xf32>
    %48 = vector.extract_strided_slice %44 {offsets = [0, 16], sizes = [8, 512], strides = [1, 1]} : vector<8x640xf32> to vector<8x512xf32>
    %49 = vector.extract_strided_slice %44 {offsets = [0, 17], sizes = [8, 512], strides = [1, 1]} : vector<8x640xf32> to vector<8x512xf32>
    %50 = vector.extract_strided_slice %44 {offsets = [0, 18], sizes = [8, 512], strides = [1, 1]} : vector<8x640xf32> to vector<8x512xf32>
    %51 = vector.extract_strided_slice %44 {offsets = [0, 32], sizes = [8, 512], strides = [1, 1]} : vector<8x640xf32> to vector<8x512xf32>
    %52 = vector.extract_strided_slice %44 {offsets = [0, 33], sizes = [8, 512], strides = [1, 1]} : vector<8x640xf32> to vector<8x512xf32>
    %53 = vector.extract_strided_slice %44 {offsets = [0, 34], sizes = [8, 512], strides = [1, 1]} : vector<8x640xf32> to vector<8x512xf32>
    %54 = tpu.concatenate %45, %46, %47, %48, %49, %50, %51, %52, %53 in 0 : vector<8x512xf32>, vector<8x512xf32>, vector<8x512xf32>, vector<8x512xf32>, vector<8x512xf32>, vector<8x512xf32>, vector<8x512xf32>, vector<8x512xf32>, vector<8x512xf32> -> vector<72x512xf32>
    %c0_17 = arith.constant 0 : index
    %c0_18 = arith.constant 0 : index
    %55 = vector.load %arg6[%c0_17, %c0_18] : memref<8x72xf32, #tpu.memory_space<vmem>>, vector<8x72xf32>
    %56 = arith.truncf %55 : vector<8x72xf32> to vector<8x72xbf16>
    %57 = arith.extf %56 : vector<8x72xbf16> to vector<8x72xf32>
    %58 = arith.subf %55, %57 : vector<8x72xf32>
    %59 = arith.truncf %54 : vector<72x512xf32> to vector<72x512xbf16>
    %60 = arith.extf %59 : vector<72x512xbf16> to vector<72x512xf32>
    %61 = arith.subf %54, %60 : vector<72x512xf32>
    %cst_19 = arith.constant dense<0.000000e+00> : vector<8x512xf32>
    %62 = tpu.matmul %57, %60, %cst_19 {dimension_numbers = #tpu.dot_dimension_numbers<[1], [0], [0], [1], [0, 0, 1, 1], [], []>} : vector<8x72xf32>, vector<72x512xf32>, vector<8x512xf32> -> vector<8x512xf32>
    %cst_20 = arith.constant dense<0.000000e+00> : vector<8x512xf32>
    %63 = tpu.matmul %58, %60, %cst_20 {dimension_numbers = #tpu.dot_dimension_numbers<[1], [0], [0], [1], [0, 0, 1, 1], [], []>} : vector<8x72xf32>, vector<72x512xf32>, vector<8x512xf32> -> vector<8x512xf32>
    %64 = arith.addf %62, %63 : vector<8x512xf32>
    %cst_21 = arith.constant dense<0.000000e+00> : vector<8x512xf32>
    %65 = tpu.matmul %57, %61, %cst_21 {dimension_numbers = #tpu.dot_dimension_numbers<[1], [0], [0], [1], [0, 0, 1, 1], [], []>} : vector<8x72xf32>, vector<72x512xf32>, vector<8x512xf32> -> vector<8x512xf32>
    %66 = arith.addf %64, %65 : vector<8x512xf32>
    %c0_22 = arith.constant 0 : index
    %c0_23 = arith.constant 0 : index
    %67 = vector.load %arg7[%c0_22, %c0_23] : memref<8x1xf32, #tpu.memory_space<vmem>>, vector<8x1xf32>
    %68 = vector.broadcast %67 : vector<8x1xf32> to vector<8x512xf32>
    %69 = arith.addf %66, %68 : vector<8x512xf32>
    %cst_24 = arith.constant 0.000000e+00 : f32
    %70 = vector.broadcast %cst_24 : f32 to vector<8x512xf32>
    %71 = arith.maximumf %69, %70 : vector<8x512xf32>
    %c0_25 = arith.constant 0 : index
    %c0_26 = arith.constant 0 : index
    %72 = vector.load %arg8[%c0_25, %c0_26] : memref<8x512xf32, #tpu.memory_space<vmem>>, vector<8x512xf32>
    tpu.vector_store %arg8[%c0_25, %c0_26], %71 {strides = array<i32>} : memref<8x512xf32, #tpu.memory_space<vmem>>, vector<8x512xf32>,
    return
  }
}

</mosaic_0001>

<bundles_post_ra>
// kernel: up_block_forward.1
= control target key start
LH: loop header
LB: loop body
LE: loop exit
PB: predicated region body
PF: predicated region fallthrough
CT: control target
= control target key end

     0   :  { %v4934_v3 = vmov 0.0   ;;  %v3217_v8 = vmov 0   ;;  %vm75_vm0 = vcmask 130048   ;;  %s3219_s13 = smov 126   ;;  %s3220_s16 = smov 112   ;;  %vm781_vm1 = vcmask 1039360   ;;  %s4925_s0 = inlined_call_operand.vmem [shape: f32[16,768], index: 0, kind: input, shape index: {}]   ;;  %s4926_s2 = inlined_call_operand.vmem [shape: f32[8,16], index: 2, kind: input, shape index: {}]   ;;  %s4927_s3 = inlined_call_operand.vmem [shape: f32[8,1], index: 3, kind: input, shape index: {}]   ;;  %s4928_s1 = inlined_call_operand.vmem [shape: f32[8,768], index: 1, kind: input, shape index: {}]   ;;  %s4929_s4 = inlined_call_operand.vmem [shape: f32[8,144], index: 4, kind: input, shape index: {}]   ;;  %s4930_s5 = inlined_call_operand.vmem [shape: f32[8,1], index: 5, kind: input, shape index: {}]   ;;  %s4931_s7 = inlined_call_operand.vmem [shape: f32[8,1], index: 7, kind: input, shape index: {}]   ;;  %s4932_s6 = inlined_call_operand.vmem [shape: f32[8,72], index: 6, kind: input, shape index: {}]   ;;  %s4933_s8 = inlined_call_operand.vmem [shape: f32[8,512], index: 8, kind: output, shape index: {}]  }
   0x1   :  { %v31_v0 = vld [vmem:[%s4925_s0 + $0x8] sm:$0xff]  ;;  %v37_v1 = vld [vmem:[%s4925_s0 + $0x38] sm:$0xff]  ;;  %143 = vmatprep.mubr.f32.mxu1 %v4934_v3  ;;  %285 = vmatprep.mubr.f32.mxu0 %v4934_v3  ;;  %v30_v6 = vld [vmem:[%s4925_s0] sm:$0xff]  ;;  %s3221_s17 = smov 111   ;;  %s3222_s18 = smov 110   ;;  %vm826_vm2 = vcmask 1031168  }
   0x2   :  { %v35_v2 = vld [vmem:[%s4925_s0 + $0x28] sm:$0xff]  ;;  %v46_v4 = vpack.c.bf16 %v37_v1, %v31_v0  ;;  %v41_v5 = vld [vmem:[%s4925_s0 + $0x58] sm:$0xff]  ;;  %v36_v7 = vld [vmem:[%s4925_s0 + $0x30] sm:$0xff]  ;;  %3209 = vset.pattern.permute.xlu0 %v3217_v8  ;;  %3210 = vset.pattern.permute.xlu1 %v3217_v8  ;;  %s3223_s19 = smov 96   ;;  %s3224_s20 = smov 95   ;;  %vm871_vm3 = vcmask 916480  }
   0x3   :  { %v50_v9 = vpack.c.bf16 %v41_v5, %v35_v2  ;;  %v45_v10 = vpack.c.bf16 %v36_v7, %v30_v6  ;;  %v34_v11 = vld [vmem:[%s4925_s0 + $0x20] sm:$0xff]  ;;  %v40_v12 = vld [vmem:[%s4925_s0 + $0x50] sm:$0xff]  ;;  %v33_v16 = vld [vmem:[%s4925_s0 + $0x18] sm:$0xff]  ;;  %s3225_s21 = smov 94   ;;  %vm916_vm4 = vcmask 908288   ;;  %vm961_vm5 = vcmask 900096  }
   0x4   :  { %v29_v13 = vld [vmem:[%s4926_s2] sm:$0xff]  ;;  %2742 = vmatprep.subr.bf16.mxu1 %v46_v4  ;;  %v49_v14 = vpack.c.bf16 %v40_v12, %v34_v11  ;;  %v39_v17 = vld [vmem:[%s4925_s0 + $0x48] sm:$0xff]  ;;  %v32_v18 = vld [vmem:[%s4925_s0 + $0x10] sm:$0xff]  ;;  %v52_v19 = vunpack.c.l.bf16 %v46_v4  ;;  %v58_v20 = vunpack.c.h.bf16 %v46_v4  ;;  %vm1006_vm6 = vcmask 785408  }
   0x5   :  { %v42_v15 = vpack.c.bf16 %v29_v13, %v29_v13  ;;  %2750 = vmatprep.subr.bf16.mxu0 %v50_v9  ;;  %2744 = vmatpush1.bf16.msra.mxu1 %v45_v10  ;;  %v48_v21 = vpack.c.bf16 %v39_v17, %v33_v16  ;;  %v38_v22 = vld [vmem:[%s4925_s0 + $0x40] sm:$0xff]  ;;  %v51_v25 = vunpack.c.l.bf16 %v45_v10  ;;  %v57_v26 = vunpack.c.h.bf16 %v45_v10  ;;  %v3321_v28 = vld [vmem:[%s4928_s1 + $0x8] sm:$0xff]  ;;  %s3218_s0 = smov 127   ;;  %v3337_v51 = vld [vmem:[%s4928_s1 + $0x10] sm:$0xff] }
   0x6   :  { %v727_v23 = vld [vmem:[%s4927_s3] sm:$0xff]  ;;  %2752 = vmatpush1.bf16.msra.mxu0 %v49_v14  ;;  %v56_v27 = vunpack.c.l.bf16 %v50_v9  ;;  %v47_v29 = vpack.c.bf16 %v38_v22, %v32_v18  ;;  %v64_v31 = vsub.f32 %v31_v0, %v52_v19  ;;  %v70_v32 = vsub.f32 %v37_v1, %v58_v20  ;;  %771 = vrot.lane.b32.xlu1 %v3321_v28, %s3218_s0 }
   0x7   :  { %v3316_v24 = vunpack.c.l.bf16 %v42_v15  ;;  %730 = vperm.xlu0 %3209, %v727_v23   ;;  %2746 = vmatprep.subr.bf16.mxu1 %v48_v21  ;;  %v62_v33 = vunpack.c.h.bf16 %v50_v9  ;;  %v54_v34 = vunpack.c.l.bf16 %v48_v21  ;;  %v60_v35 = vunpack.c.h.bf16 %v48_v21  ;;  %v739_v57 = vld [vmem:[%s4928_s1] sm:$0xff] }
   0x8   :  { %2754 = vmatprep.subr.bf16.mxu0 %v46_v4  ;;  %v63_v36 = vsub.f32 %v30_v6, %v51_v25  ;;  %v69_v37 = vsub.f32 %v36_v7, %v57_v26  ;;  %v68_v38 = vsub.f32 %v35_v2, %v56_v27  ;;  %v55_v39 = vunpack.c.l.bf16 %v49_v14  ;;  %v3444_v15 = vld [vmem:[%s4928_s1 + $0x20] sm:$0xff] }
   0x9   :  { %v44_v30 = vsub.f32 %v29_v13, %v3316_v24  ;;  %v61_v40 = vunpack.c.h.bf16 %v49_v14  ;;  %v66_v41 = vsub.f32 %v33_v16, %v54_v34  ;;  %v72_v42 = vsub.f32 %v39_v17, %v60_v35  ;;  %5017 = vst [vmem:[#allocation8_spill] sm:$0xff] %v3444_v15 }
   0xa   :  { %v2765_v43 = vpack.c.bf16 %v70_v32, %v64_v31  ;;  %v74_v44 = vsub.f32 %v41_v5, %v62_v33  ;;  %v53_v45 = vunpack.c.l.bf16 %v47_v29  ;;  %v59_v46 = vunpack.c.h.bf16 %v47_v29  ;;  %816 = vrot.lane.b32.xlu1 %v3321_v28, %s3219_s13 }
   0xb   :  { %2717 = vmatmul.mubr.msk.f32.vlgmr.msra.gmra.mrb[0].mxu1 %vm75_vm0, %v44_v30  ;;  %2719 = vmatmul.mubr.msk.f32.vlgmr.msra.gmra.mrb[0].mxu0 %vm75_vm0, %v44_v30  ;;  %v2769_v47 = vpack.c.bf16 %v72_v42, %v66_v41  ;;  %v2767_v48 = vpack.c.bf16 %v69_v37, %v63_v36  ;;  %v67_v49 = vsub.f32 %v34_v11, %v55_v39  ;;  %v744_v39 = vld [vmem:[%s4928_s1 + $0x28] sm:$0xff]  ;;  %vm1051_vm7 = vcmask 777216  }
   0xc   :  { %2748 = vmatpush1.bf16.msra.mxu1 %v47_v29  ;;  %2756 = vmatpush1.bf16.msra.mxu0 %v45_v10  ;;  %v73_v50 = vsub.f32 %v40_v12, %v61_v40  ;;  %v2773_v52 = vpack.c.bf16 %v74_v44, %v68_v38  ;;  %v65_v53 = vsub.f32 %v32_v18, %v53_v45  ;;  %v3428_v12 = vld [vmem:[%s4928_s1 + $0x18] sm:$0xff]  ;;  %vm1096_vm8 = vcmask 769024  }
   0xd   :  { %214 = vmatprep.mubr.f32.mxu1 %v4934_v3  ;;  %359 = vmatprep.mubr.f32.mxu0 %v4934_v3  ;;  %v71_v54 = vsub.f32 %v38_v22, %v59_v46  ;;  %vm2258_vm9 = vcmask 588800  }
   0xe   :  { %2762 = vmatprep.subr.bf16.mxu0 %v50_v9  ;;  %2758 = vmatprep.subr.bf16.mxu1 %v48_v21  ;;  %v2775_v55 = vpack.c.bf16 %v73_v50, %v67_v49 }
   0xf   :  { %2718 = vmatmul.mubr.msk.f32.vlgmr.msra.gmra.mrb[2].mxu1 %vm75_vm0, %v44_v30  ;;  %2720 = vmatmul.mubr.msk.f32.vlgmr.msra.gmra.mrb[2].mxu0 %vm75_vm0, %v3316_v24  ;;  %v2771_v56 = vpack.c.bf16 %v71_v54, %v65_v53 }
  0x10   :  { %2764 = vmatpush1.bf16.msra.mxu0 %v49_v14  ;;  %501 = vmatprep.mubr.f32.mxu0 %v4934_v3 }
  0x11   :  { %2766 = vmatprep.subr.bf16.mxu0 %v2765_v43  ;;  %2760 = vmatpush1.bf16.msra.mxu1 %v47_v29  ;;  %v1118_v29 = vld [vmem:[%s4929_s4 + $0x8] sm:$0xff] }
  0x12   :  { %430 = vmatprep.mubr.f32.mxu1 %v4934_v3  ;;  %2770 = vmatprep.subr.bf16.mxu1 %v2769_v47  ;;  %v1120_v30 = vpack.c.bf16 %v1118_v29, %v1118_v29 }
  0x13   :  { %2722 = vmatmul.mubr.msk.f32.vlgmr.msra.gmra.mrb[0].mxu0 %vm75_vm0, %v3316_v24  ;;  %773 = vrot.lane.b32.xlu0 %v3337_v51, %s3218_s0 }
  0x14   :  { %2768 = vmatpush1.bf16.msra.mxu0 %v2767_v48  ;;  %572 = vmatprep.mubr.f32.mxu0 %v4934_v3  ;;  %v3551_v32 = vunpack.c.l.bf16 %v1120_v30 }
  0x15   :  { %2774 = vmatprep.subr.bf16.mxu0 %v2773_v52  ;;  %861 = vrot.lane.b32.xlu1 %v3321_v28, %s3220_s16 }
  0x16   :  { %5018 = vst [vmem:[#allocation9_spill] sm:$0xff] %v3551_v32  ;;  %v3558_v34 = vsub.f32 %v1118_v29, %v3551_v32 }
  0x17   :  { %2721 = vmatmul.mubr.msk.f32.vlgmr.msra.gmra.mrb[2].mxu1 %vm75_vm0, %v3316_v24  ;;  %2723 = vmatmul.mubr.msk.f32.vlgmr.msra.gmra.mrb[2].mxu0 %vm75_vm0, %v3316_v24 }
  0x18   :  { %2776 = vmatpush1.bf16.msra.mxu0 %v2775_v55  ;;  %714 = vmatprep.mubr.f32.mxu0 %v4934_v3 }
  0x19   :  { %2772 = vmatpush1.bf16.msra.mxu1 %v2771_v56  ;;  %643 = vmatprep.mubr.f32.mxu1 %v4934_v3 }
  0x1a   :  { %769 = vrot.lane.b32.xlu0 %v739_v57, %s3218_s0  ;;  %906 = vrot.lane.b32.xlu1 %v3321_v28, %s3221_s17 }
  0x1b   :  { %2725 = vmatmul.mubr.msk.f32.vlgmr.msra.gmra.mrb[0].mxu0 %vm75_vm0, %v3316_v24 }
  0x1c   :  { %2730 = vmatprep.mubr.msk.f32.mxu0 %vm75_vm0, %v3551_v32 }
  0x1e   :  { %818 = vrot.lane.b32.xlu0 %v3337_v51, %s3219_s13  ;;  %951 = vrot.lane.b32.xlu1 %v3321_v28, %s3222_s18 }
  0x1f   :  { %2724 = vmatmul.mubr.msk.f32.vlgmr.msra.gmra.mrb[2].mxu1 %vm75_vm0, %v3316_v24 }
  0x20   :  { %2726 = vmatprep.mubr.msk.f32.mxu1 %vm75_vm0, %v3558_v34 }
  0x22   :  { %814 = vrot.lane.b32.xlu0 %v739_v57, %s3219_s13  ;;  %996 = vrot.lane.b32.xlu1 %v3321_v28, %s3223_s19 }
  0x26   :  { %863 = vrot.lane.b32.xlu0 %v3337_v51, %s3220_s16  ;;  %1041 = vrot.lane.b32.xlu1 %v3321_v28, %s3224_s20 }
  0x2a   :  { %859 = vrot.lane.b32.xlu0 %v739_v57, %s3220_s16  ;;  %1086 = vrot.lane.b32.xlu1 %v3321_v28, %s3225_s21 }
  0x2e   :  { %908 = vrot.lane.b32.xlu0 %v3337_v51, %s3221_s17 }
  0x32   :  { %904 = vrot.lane.b32.xlu0 %v739_v57, %s3221_s17 }
  0x36   :  { %953 = vrot.lane.b32.xlu0 %v3337_v51, %s3222_s18 }
  0x3a   :  { %949 = vrot.lane.b32.xlu0 %v739_v57, %s3222_s18 }
  0x3e   :  { %998 = vrot.lane.b32.xlu0 %v3337_v51, %s3223_s19 }
  0x42   :  { %994 = vrot.lane.b32.xlu0 %v739_v57, %s3223_s19 }
  0x46   :  { %1043 = vrot.lane.b32.xlu0 %v3337_v51, %s3224_s20 }
  0x4a   :  { %1039 = vrot.lane.b32.xlu0 %v739_v57, %s3224_s20 }
  0x4e   :  { %1088 = vrot.lane.b32.xlu0 %v3337_v51, %s3225_s21 }
  0x52   :  { %1084 = vrot.lane.b32.xlu0 %v739_v57, %s3225_s21 }
  0x78   :  { %v3526_v25 = vpop.permute.xlu1 %771 }
  0x7c   :  { %v3536_v27 = vpop.permute.xlu1 %816 }
  0x86   :  { %v3394_v61 = vpop.permute.xlu0 %730 }
  0x87   :  { %v3549_v31 = vpop.permute.xlu1 %861 }
  0x8a   :  { %v3462_v17 = vpop.permute.xlu0 %773 }
  0x8c   :  { %v3568_v35 = vpop.permute.xlu1 %906 }
  0x8e   :  { %v3472_v18 = vpop.permute.xlu0 %769 }
  0x8f   :  { %v787_v48 = vsel %vm781_vm1, %v3472_v18, %v3526_v25 }
  0x90   :  { %v3578_v37 = vpop.permute.xlu1 %951 }
  0x92   :  { %v3478_v19 = vpop.permute.xlu0 %818 }
  0x94   :  { %v3591_v40 = vpop.permute.xlu1 %996 }
  0x96   :  { %v3488_v20 = vpop.permute.xlu0 %814 }
  0x97   :  { %v832_v30 = vsel %vm826_vm2, %v3488_v20, %v3536_v27 }
  0x98   :  { %v3599_v42 = vpop.permute.xlu1 %1041 }
  0x9a   :  { %v3494_v21 = vpop.permute.xlu0 %863 }
  0x9c   :  { %v3608_v44 = vpop.permute.xlu1 %1086 }
  0x9e   :  { %v3504_v22 = vpop.permute.xlu0 %859 }
  0x9f   :  { %v877_v20 = vsel %vm871_vm3, %v3504_v22, %v3549_v31 }
  0xa2   :  { %v3510_v23 = vpop.permute.xlu0 %908 }
  0xa6   :  { %v3520_v24 = vpop.permute.xlu0 %904 }
  0xaa   :  { %v3528_v26 = vpop.permute.xlu0 %953 }
  0xde   :  { %v145_v58 = vpop.f32.mrb[0].mxu1 }
  0xdf   :  { %v147_v59 = vpop.f32.mrb[1].mxu1 }
  0xea   :  { %v574_v60 = vpop.f32.mrb[2].mxu0 }
  0xeb   :  { %v3170_v62 = vadd.f32 %v574_v60, %v145_v58  ;;  %v576_v63 = vpop.f32.mrb[3].mxu0 }
  0xec   :  { %v3171_v0 = vadd.f32 %v576_v63, %v147_v59 }
  0xed   :  { %v3397_v1 = vadd.f32 %v3170_v62, %v3394_v61 }
  0xee   :  { %v3400_v2 = vadd.f32 %v3171_v0, %v3394_v61  ;;  %v716_v4 = vpop.f32.mrb[0].mxu0 }
  0xef   :  { %5011 = vst [vmem:[#allocation2_spill] sm:$0xff] %v3397_v1  ;;  %757 = vrot.lane.b32.xlu1 %v3397_v1, %s3218_s0  ;;  %v3404_v5 = vpop.f32.mrb[1].mxu0  ;;  %v3413_v7 = vpack.c.bf16 %v739_v57, %v3397_v1  ;;  %v3416_v8 = vadd.f32 %v3394_v61, %v716_v4 }
  0xf0   :  { %5012 = vst [vmem:[#allocation3_spill] sm:$0xff] %v3400_v2  ;;  %759 = vrot.lane.b32.xlu0 %v3400_v2, %s3218_s0  ;;  %v3410_v6 = vpack.c.bf16 %v3321_v28, %v3400_v2  ;;  %v3540_v28 = vpop.permute.xlu0 %949  ;;  %v3648_v60 = vadd.f32 %v3394_v61, %v3404_v5 }
  0xf1   :  { %5014 = vst [vmem:[#allocation5_spill] sm:$0xff] %v3413_v7  ;;  %v967_v22 = vsel %vm961_vm5, %v3540_v28, %v3578_v37  ;;  %v968_v28 = vsel %vm961_vm5, %v3578_v37, %v3528_v26 }
  0xf2   :  { %5013 = vst [vmem:[#allocation4_spill] sm:$0xff] %v3410_v6  ;;  %v645_v9 = vpop.f32.mrb[2].mxu1  ;;  %2778 = vmatprep.subr.bf16.mxu1 %v3410_v6 }
  0xf3   :  { %v3420_v10 = vadd.f32 %v3394_v61, %v645_v9  ;;  %v647_v11 = vpop.f32.mrb[3].mxu1  ;;  %802 = vrot.lane.b32.xlu1 %v3397_v1, %s3219_s13  ;;  %2780 = vmatpush1.bf16.msra.mxu1 %v3413_v7 }
  0xf4   :  { %v3431_v13 = vadd.f32 %v3394_v61, %v647_v11  ;;  %765 = vrot.lane.b32.xlu0 %v3416_v8, %s3218_s0  ;;  %v3553_v33 = vpop.permute.xlu0 %998 }
  0xf5   :  { %5015 = vst [vmem:[#allocation6_spill] sm:$0xff] %v3420_v10  ;;  %v3448_v16 = vpack.c.bf16 %v3337_v51, %v3420_v10 }
  0xf6   :  { %5016 = vst [vmem:[#allocation7_spill] sm:$0xff] %v3431_v13  ;;  %v3437_v14 = vpack.c.bf16 %v3428_v12, %v3431_v13 }
  0xf7   :  { %847 = vrot.lane.b32.xlu1 %v3397_v1, %s3220_s16 }
  0xf8   :  { %2913 = vmatprep.subr.bf16.mxu0 %v3437_v14  ;;  %777 = vrot.lane.b32.xlu0 %v3444_v15, %s3218_s0  ;;  %v3572_v36 = vpop.permute.xlu0 %994 }
  0xf9   :  { %2915 = vmatpush1.bf16.msra.mxu0 %v3448_v16 }
  0xfb   :  { %892 = vrot.lane.b32.xlu1 %v3397_v1, %s3221_s17 }
  0xfc   :  { %810 = vrot.lane.b32.xlu0 %v3416_v8, %s3219_s13  ;;  %v3580_v38 = vpop.permute.xlu0 %1043 }
  0xff   :  { %937 = vrot.lane.b32.xlu1 %v3397_v1, %s3222_s18 }
 0x100   :  { %822 = vrot.lane.b32.xlu0 %v3444_v15, %s3219_s13  ;;  %v3594_v41 = vpop.permute.xlu0 %1039 }
 0x103   :  { %982 = vrot.lane.b32.xlu1 %v3397_v1, %s3223_s19 }
 0x104   :  { %855 = vrot.lane.b32.xlu0 %v3416_v8, %s3220_s16  ;;  %v3601_v43 = vpop.permute.xlu0 %1088 }
 0x107   :  { %1027 = vrot.lane.b32.xlu1 %v3397_v1, %s3224_s20 }
 0x108   :  { %867 = vrot.lane.b32.xlu0 %v3444_v15, %s3220_s16  ;;  %v3611_v45 = vpop.permute.xlu0 %1084 }
 0x10b   :  { %1072 = vrot.lane.b32.xlu1 %v3397_v1, %s3225_s21 }
 0x10c   :  { %900 = vrot.lane.b32.xlu0 %v3416_v8, %s3221_s17 }
 0x10f   :  { %804 = vrot.lane.b32.xlu1 %v3400_v2, %s3219_s13 }
 0x110   :  { %806 = vrot.lane.b32.xlu0 %v3420_v10, %s3219_s13 }
 0x113   :  { %849 = vrot.lane.b32.xlu1 %v3400_v2, %s3220_s16 }
 0x114   :  { %851 = vrot.lane.b32.xlu0 %v3420_v10, %s3220_s16 }
 0x117   :  { %894 = vrot.lane.b32.xlu1 %v3400_v2, %s3221_s17 }
 0x118   :  { %896 = vrot.lane.b32.xlu0 %v3420_v10, %s3221_s17 }
 0x11b   :  { %939 = vrot.lane.b32.xlu1 %v3400_v2, %s3222_s18 }
 0x11c   :  { %941 = vrot.lane.b32.xlu0 %v3420_v10, %s3222_s18 }
 0x11f   :  { %984 = vrot.lane.b32.xlu1 %v3400_v2, %s3223_s19 }
 0x120   :  { %986 = vrot.lane.b32.xlu0 %v3420_v10, %s3223_s19 }
 0x123   :  { %1029 = vrot.lane.b32.xlu1 %v3400_v2, %s3224_s20 }
 0x124   :  { %1031 = vrot.lane.b32.xlu0 %v3420_v10, %s3224_s20 }
 0x127   :  { %1074 = vrot.lane.b32.xlu1 %v3400_v2, %s3225_s21 }
 0x128   :  { %1076 = vrot.lane.b32.xlu0 %v3420_v10, %s3225_s21 }
 0x12b   :  { %761 = vrot.lane.b32.xlu1 %v3420_v10, %s3218_s0 }
 0x12c   :  { %912 = vrot.lane.b32.xlu0 %v3444_v15, %s3221_s17 }
 0x12f   :  { %775 = vrot.lane.b32.xlu1 %v3428_v12, %s3218_s0 }
 0x130   :  { %945 = vrot.lane.b32.xlu0 %v3416_v8, %s3222_s18 }
 0x133   :  { %820 = vrot.lane.b32.xlu1 %v3428_v12, %s3219_s13 }
 0x134   :  { %957 = vrot.lane.b32.xlu0 %v3444_v15, %s3222_s18 }
 0x137   :  { %865 = vrot.lane.b32.xlu1 %v3428_v12, %s3220_s16 }
 0x138   :  { %990 = vrot.lane.b32.xlu0 %v3416_v8, %s3223_s19 }
 0x13b   :  { %910 = vrot.lane.b32.xlu1 %v3428_v12, %s3221_s17 }
 0x13c   :  { %1002 = vrot.lane.b32.xlu0 %v3444_v15, %s3223_s19 }
 0x13f   :  { %955 = vrot.lane.b32.xlu1 %v3428_v12, %s3222_s18 }
 0x140   :  { %1035 = vrot.lane.b32.xlu0 %v3416_v8, %s3224_s20 }
 0x143   :  { %1000 = vrot.lane.b32.xlu1 %v3428_v12, %s3223_s19 }
 0x144   :  { %1047 = vrot.lane.b32.xlu0 %v3444_v15, %s3224_s20 }
 0x147   :  { %1045 = vrot.lane.b32.xlu1 %v3428_v12, %s3224_s20 }
 0x148   :  { %1080 = vrot.lane.b32.xlu0 %v3416_v8, %s3225_s21 }
 0x14b   :  { %763 = vrot.lane.b32.xlu1 %v3431_v13, %s3218_s0 }
 0x14c   :  { %1092 = vrot.lane.b32.xlu0 %v3444_v15, %s3225_s21 }
 0x14f   :  { %808 = vrot.lane.b32.xlu1 %v3431_v13, %s3219_s13 }
 0x150   :  { %779 = vrot.lane.b32.xlu0 %v744_v39, %s3218_s0 }
 0x153   :  { %853 = vrot.lane.b32.xlu1 %v3431_v13, %s3220_s16 }
 0x154   :  { %824 = vrot.lane.b32.xlu0 %v744_v39, %s3219_s13 }
 0x157   :  { %898 = vrot.lane.b32.xlu1 %v3431_v13, %s3221_s17 }
 0x158   :  { %869 = vrot.lane.b32.xlu0 %v744_v39, %s3220_s16 }
 0x15b   :  { %943 = vrot.lane.b32.xlu1 %v3431_v13, %s3222_s18 }
 0x15c   :  { %914 = vrot.lane.b32.xlu0 %v744_v39, %s3221_s17 }
 0x15f   :  { %988 = vrot.lane.b32.xlu1 %v3431_v13, %s3223_s19 }
 0x160   :  { %959 = vrot.lane.b32.xlu0 %v744_v39, %s3222_s18 }
 0x161   :  { %v758_v46 = vpop.permute.xlu1 %757 }
 0x162   :  { %v3616_v47 = vpop.permute.xlu0 %759 }
 0x163   :  { %v782_v49 = vsel %vm781_vm1, %v758_v46, %v3616_v47  ;;  %1033 = vrot.lane.b32.xlu1 %v3431_v13, %s3224_s20 }
 0x164   :  { %v3625_v50 = vpack.c.bf16 %v787_v48, %v782_v49  ;;  %1004 = vrot.lane.b32.xlu0 %v744_v39, %s3223_s19 }
 0x165   :  { %v803_v51 = vpop.permute.xlu1 %802 }
 0x166   :  { %v1180_v52 = vunpack.c.l.bf16 %v3625_v50  ;;  %v1185_v53 = vunpack.c.h.bf16 %v3625_v50  ;;  %v3630_v54 = vpop.permute.xlu0 %765 }
 0x167   :  { %1078 = vrot.lane.b32.xlu1 %v3431_v13, %s3225_s21 }
 0x168   :  { %v3634_v55 = vsub.f32 %v782_v49, %v1180_v52  ;;  %v3636_v56 = vsub.f32 %v787_v48, %v1185_v53  ;;  %1049 = vrot.lane.b32.xlu0 %v744_v39, %s3224_s20  ;;  %v833_v48 = vsel %vm826_vm2, %v3536_v27, %v3478_v19  ;;  %v922_v27 = vsel %vm916_vm4, %v3520_v24, %v3568_v35 }
 0x169   :  { %v848_v57 = vpop.permute.xlu1 %847 }
 0x16a   :  { %5019 = vst [vmem:[#allocation10_spill] sm:$0xff] %v3634_v55  ;;  %5020 = vst [vmem:[#allocation11_spill] sm:$0xff] %v3636_v56  ;;  %v3641_v59 = vpop.permute.xlu0 %777 }
 0x16b   :  { %1090 = vrot.lane.b32.xlu1 %v3428_v12, %s3225_s21 }
 0x16c   :  { %1094 = vrot.lane.b32.xlu0 %v744_v39, %s3225_s21 }
 0x16d   :  { %v893_v62 = vpop.permute.xlu1 %892 }
 0x16e   :  { %v3650_v63 = vpop.permute.xlu0 %810 }
 0x16f   :  { %767 = vrot.lane.b32.xlu1 %v3648_v60, %s3218_s0 }
 0x171   :  { %v3654_v0 = vpop.permute.xlu1 %937 }
 0x172   :  { %v3656_v4 = vpop.permute.xlu0 %822 }
 0x173   :  { %812 = vrot.lane.b32.xlu1 %v3648_v60, %s3219_s13 }
 0x175   :  { %v3660_v9 = vpop.permute.xlu1 %982 }
 0x176   :  { %v3662_v11 = vpop.permute.xlu0 %855 }
 0x177   :  { %857 = vrot.lane.b32.xlu1 %v3648_v60, %s3220_s16 }
 0x179   :  { %v3666_v61 = vpop.permute.xlu1 %1027 }
 0x17a   :  { %v3668_v5 = vpop.permute.xlu0 %867 }
 0x17b   :  { %902 = vrot.lane.b32.xlu1 %v3648_v60, %s3221_s17 }
 0x17d   :  { %v3672_v12 = vpop.permute.xlu1 %1072 }
 0x17e   :  { %v3674_v18 = vpop.permute.xlu0 %900 }
 0x17f   :  { %947 = vrot.lane.b32.xlu1 %v3648_v60, %s3222_s18 }
 0x181   :  { %v805_v29 = vpop.permute.xlu1 %804 }
 0x182   :  { %v827_v39 = vsel %vm826_vm2, %v803_v51, %v805_v29  ;;  %v3682_v46 = vpop.permute.xlu0 %806  ;;  %v878_v51 = vsel %vm871_vm3, %v3549_v31, %v3494_v21 }
 0x183   :  { %v3687_v49 = vpack.c.bf16 %v832_v30, %v827_v39  ;;  %v828_v52 = vsel %vm826_vm2, %v805_v29, %v3682_v46  ;;  %992 = vrot.lane.b32.xlu1 %v3648_v60, %s3223_s19  ;;  %v923_v29 = vsel %vm916_vm4, %v3568_v35, %v3510_v23 }
 0x184   :  { %v3699_v53 = vpack.c.bf16 %v833_v48, %v828_v52 }
 0x185   :  { %5021 = vst [vmem:[#allocation12_spill] sm:$0xff] %v3687_v49  ;;  %v1190_v58 = vunpack.c.l.bf16 %v3687_v49  ;;  %v1195_v3 = vunpack.c.h.bf16 %v3687_v49  ;;  %v850_v55 = vpop.permute.xlu1 %849 }
 0x186   :  { %5022 = vst [vmem:[#allocation13_spill] sm:$0xff] %v3699_v53  ;;  %v1191_v31 = vunpack.c.l.bf16 %v3699_v53  ;;  %v872_v56 = vsel %vm871_vm3, %v848_v57, %v850_v55  ;;  %v3714_v1 = vpop.permute.xlu0 %851  ;;  %v1196_v24 = vunpack.c.h.bf16 %v3699_v53 }
 0x187   :  { %v3717_v2 = vsub.f32 %v827_v39, %v1190_v58  ;;  %v3719_v35 = vsub.f32 %v832_v30, %v1195_v3  ;;  %v3721_v7 = vpack.c.bf16 %v877_v20, %v872_v56  ;;  %v873_v6 = vsel %vm871_vm3, %v850_v55, %v3714_v1  ;;  %1037 = vrot.lane.b32.xlu1 %v3648_v60, %s3224_s20 }
 0x188   :  { %v3730_v57 = vsub.f32 %v828_v52, %v1191_v31  ;;  %v3732_v10 = vpack.c.bf16 %v878_v51, %v873_v6  ;;  %v3734_v58 = vsub.f32 %v833_v48, %v1196_v24 }
 0x189   :  { %5023 = vst [vmem:[#allocation14_spill] sm:$0xff] %v3717_v2  ;;  %5024 = vst [vmem:[#allocation15_spill] sm:$0xff] %v3719_v35  ;;  %v1200_v30 = vunpack.c.l.bf16 %v3721_v7  ;;  %v1205_v55 = vunpack.c.h.bf16 %v3721_v7  ;;  %v895_v39 = vpop.permute.xlu1 %894 }
 0x18a   :  { %5025 = vst [vmem:[#allocation16_spill] sm:$0xff] %v3721_v7  ;;  %5026 = vst [vmem:[#allocation17_spill] sm:$0xff] %v3730_v57  ;;  %v1201_v13 = vunpack.c.l.bf16 %v3732_v10  ;;  %v917_v32 = vsel %vm916_vm4, %v893_v62, %v895_v39  ;;  %v3742_v37 = vpop.permute.xlu0 %896  ;;  %v1206_v48 = vunpack.c.h.bf16 %v3732_v10  ;;  %v1012_v62 = vsel %vm1006_vm6, %v3572_v36, %v3591_v40 }
 0x18b   :  { %5027 = vst [vmem:[#allocation18_spill] sm:$0xff] %v3732_v10  ;;  %5028 = vst [vmem:[#allocation19_spill] sm:$0xff] %v3734_v58  ;;  %v3747_v31 = vsub.f32 %v872_v56, %v1200_v30  ;;  %v3749_v24 = vsub.f32 %v877_v20, %v1205_v55  ;;  %v3751_v3 = vpack.c.bf16 %v922_v27, %v917_v32  ;;  %1082 = vrot.lane.b32.xlu1 %v3648_v60, %s3225_s21 }
 0x18c   :  { %v918_v2 = vsel %vm916_vm4, %v895_v39, %v3742_v37  ;;  %v3760_v35 = vsub.f32 %v873_v6, %v1201_v13  ;;  %v3764_v56 = vsub.f32 %v878_v51, %v1206_v48 }
 0x18d   :  { %5029 = vst [vmem:[#allocation20_spill] sm:$0xff] %v3747_v31  ;;  %5030 = vst [vmem:[#allocation21_spill] sm:$0xff] %v3749_v24  ;;  %v3762_v52 = vpack.c.bf16 %v923_v29, %v918_v2  ;;  %v1210_v30 = vunpack.c.l.bf16 %v3751_v3  ;;  %v1215_v55 = vunpack.c.h.bf16 %v3751_v3  ;;  %v940_v39 = vpop.permute.xlu1 %939 }
 0x18e   :  { %5031 = vst [vmem:[#allocation22_spill] sm:$0xff] %v3751_v3  ;;  %5032 = vst [vmem:[#allocation23_spill] sm:$0xff] %v3760_v35  ;;  %v962_v36 = vsel %vm961_vm5, %v3654_v0, %v940_v39  ;;  %v3773_v6 = vpop.permute.xlu0 %941  ;;  %v1013_v0 = vsel %vm1006_vm6, %v3591_v40, %v3553_v33 }
 0x18f   :  { %5033 = vst [vmem:[#allocation24_spill] sm:$0xff] %v3762_v52  ;;  %5034 = vst [vmem:[#allocation25_spill] sm:$0xff] %v3764_v56  ;;  %v1211_v60 = vunpack.c.l.bf16 %v3762_v52  ;;  %v1216_v51 = vunpack.c.h.bf16 %v3762_v52  ;;  %v3778_v48 = vsub.f32 %v917_v32, %v1210_v30  ;;  %v3780_v20 = vsub.f32 %v922_v27, %v1215_v55 }
 0x190   :  { %v3782_v31 = vpack.c.bf16 %v967_v22, %v962_v36  ;;  %v963_v24 = vsel %vm961_vm5, %v940_v39, %v3773_v6  ;;  %v1057_v32 = vsel %vm1051_vm7, %v3594_v41, %v3599_v42 }
 0x191   :  { %5035 = vst [vmem:[#allocation26_spill] sm:$0xff] %v3778_v48  ;;  %5036 = vst [vmem:[#allocation27_spill] sm:$0xff] %v3780_v20  ;;  %v3789_v57 = vsub.f32 %v918_v2, %v1211_v60  ;;  %v3791_v58 = vpack.c.bf16 %v968_v28, %v963_v24  ;;  %v3793_v13 = vsub.f32 %v923_v29, %v1216_v51  ;;  %v985_v39 = vpop.permute.xlu1 %984 }
 0x192   :  { %5037 = vst [vmem:[#allocation28_spill] sm:$0xff] %v3782_v31  ;;  %v1220_v30 = vunpack.c.l.bf16 %v3782_v31  ;;  %v1225_v55 = vunpack.c.h.bf16 %v3782_v31  ;;  %v1007_v2 = vsel %vm1006_vm6, %v3660_v9, %v985_v39  ;;  %v3805_v60 = vpop.permute.xlu0 %986  ;;  %v1058_v9 = vsel %vm1051_vm7, %v3599_v42, %v3580_v38 }
 0x193   :  { %5038 = vst [vmem:[#allocation29_spill] sm:$0xff] %v3789_v57  ;;  %5039 = vst [vmem:[#allocation30_spill] sm:$0xff] %v3791_v58  ;;  %v1221_v40 = vunpack.c.l.bf16 %v3791_v58  ;;  %v1226_v41 = vunpack.c.h.bf16 %v3791_v58  ;;  %v3814_v48 = vpack.c.bf16 %v1012_v62, %v1007_v2  ;;  %v1008_v20 = vsel %vm1006_vm6, %v985_v39, %v3805_v60 }
 0x194   :  { %5040 = vst [vmem:[#allocation31_spill] sm:$0xff] %v3793_v13  ;;  %v3810_v51 = vsub.f32 %v962_v36, %v1220_v30  ;;  %v3812_v27 = vsub.f32 %v967_v22, %v1225_v55  ;;  %v3823_v56 = vpack.c.bf16 %v1013_v0, %v1008_v20 }
 0x195   :  { %5043 = vst [vmem:[#allocation34_spill] sm:$0xff] %v3814_v48  ;;  %v3821_v35 = vsub.f32 %v963_v24, %v1221_v40  ;;  %v3825_v29 = vsub.f32 %v968_v28, %v1226_v41  ;;  %v1230_v36 = vunpack.c.l.bf16 %v3814_v48  ;;  %v1235_v30 = vunpack.c.h.bf16 %v3814_v48  ;;  %v1030_v55 = vpop.permute.xlu1 %1029 }
 0x196   :  { %5041 = vst [vmem:[#allocation32_spill] sm:$0xff] %v3810_v51  ;;  %5042 = vst [vmem:[#allocation33_spill] sm:$0xff] %v3812_v27  ;;  %v1231_v39 = vunpack.c.l.bf16 %v3823_v56  ;;  %v1052_v42 = vsel %vm1051_vm7, %v3666_v61, %v1030_v55  ;;  %v3834_v24 = vpop.permute.xlu0 %1031  ;;  %v1236_v40 = vunpack.c.h.bf16 %v3823_v56  ;;  %v1103_v61 = vsel %vm1096_vm8, %v3608_v44, %v3601_v43 }
 0x197   :  { %5044 = vst [vmem:[#allocation35_spill] sm:$0xff] %v3821_v35  ;;  %5045 = vst [vmem:[#allocation36_spill] sm:$0xff] %v3823_v56  ;;  %v3839_v41 = vsub.f32 %v1007_v2, %v1230_v36  ;;  %v3841_v22 = vsub.f32 %v1012_v62, %v1235_v30  ;;  %v3843_v51 = vpack.c.bf16 %v1057_v32, %v1052_v42 }
 0x198   :  { %5046 = vst [vmem:[#allocation37_spill] sm:$0xff] %v3825_v29  ;;  %v1053_v27 = vsel %vm1051_vm7, %v1030_v55, %v3834_v24  ;;  %v3850_v57 = vsub.f32 %v1008_v20, %v1231_v39  ;;  %v3854_v28 = vsub.f32 %v1013_v0, %v1236_v40  ;;  %v1102_v62 = vsel %vm1096_vm8, %v3611_v45, %v3608_v44 }
 0x199   :  { %5047 = vst [vmem:[#allocation38_spill] sm:$0xff] %v3839_v41  ;;  %5048 = vst [vmem:[#allocation39_spill] sm:$0xff] %v3841_v22  ;;  %v3852_v13 = vpack.c.bf16 %v1058_v9, %v1053_v27  ;;  %v1240_v36 = vunpack.c.l.bf16 %v3843_v51  ;;  %v1245_v30 = vunpack.c.h.bf16 %v3843_v51  ;;  %v1075_v55 = vpop.permute.xlu1 %1074  ;;  %v788_v0 = vsel %vm781_vm1, %v3526_v25, %v3462_v17 }
 0x19a   :  { %5049 = vst [vmem:[#allocation40_spill] sm:$0xff] %v3843_v51  ;;  %5050 = vst [vmem:[#allocation41_spill] sm:$0xff] %v3850_v57  ;;  %v1097_v20 = vsel %vm1096_vm8, %v3672_v12, %v1075_v55  ;;  %v3866_v39 = vpop.permute.xlu0 %1076 }
 0x19b   :  { %5051 = vst [vmem:[#allocation42_spill] sm:$0xff] %v3852_v13  ;;  %5052 = vst [vmem:[#allocation43_spill] sm:$0xff] %v3854_v28  ;;  %v1241_v35 = vunpack.c.l.bf16 %v3852_v13  ;;  %v1246_v44 = vunpack.c.h.bf16 %v3852_v13  ;;  %v3871_v45 = vsub.f32 %v1052_v42, %v1240_v36  ;;  %v3873_v40 = vsub.f32 %v1057_v32, %v1245_v30 }
 0x19c   :  { %v3875_v2 = vpack.c.bf16 %v1102_v62, %v1097_v20  ;;  %v1098_v41 = vsel %vm1096_vm8, %v1075_v55, %v3866_v39 }
 0x19d   :  { %5053 = vst [vmem:[#allocation44_spill] sm:$0xff] %v3871_v45  ;;  %5054 = vst [vmem:[#allocation45_spill] sm:$0xff] %v3873_v40  ;;  %v3879_v22 = vsub.f32 %v1053_v27, %v1241_v35  ;;  %v3881_v29 = vpack.c.bf16 %v1103_v61, %v1098_v41  ;;  %v3883_v12 = vsub.f32 %v1058_v9, %v1246_v44  ;;  %v762_v30 = vpop.permute.xlu1 %761 }
 0x19e   :  { %5055 = vst [vmem:[#allocation46_spill] sm:$0xff] %v3875_v2  ;;  %v1250_v32 = vunpack.c.l.bf16 %v3875_v2  ;;  %v1255_v36 = vunpack.c.h.bf16 %v3875_v2  ;;  %v783_v35 = vsel %vm781_vm1, %v3616_v47, %v762_v30  ;;  %v3895_v27 = vpop.permute.xlu0 %912 }
 0x19f   :  { %5056 = vst [vmem:[#allocation47_spill] sm:$0xff] %v3879_v22  ;;  %5057 = vst [vmem:[#allocation48_spill] sm:$0xff] %v3881_v29  ;;  %v1251_v55 = vunpack.c.l.bf16 %v3881_v29  ;;  %v1256_v25 = vunpack.c.h.bf16 %v3881_v29  ;;  %v3904_v45 = vpack.c.bf16 %v788_v0, %v783_v35 }
 0x1a0   :  { %5058 = vst [vmem:[#allocation49_spill] sm:$0xff] %v3883_v12  ;;  %v3900_v44 = vsub.f32 %v1097_v20, %v1250_v32  ;;  %v3902_v42 = vsub.f32 %v1102_v62, %v1255_v36 }
 0x1a1   :  { %v3906_v40 = vsub.f32 %v1098_v41, %v1251_v55  ;;  %v3908_v57 = vsub.f32 %v1103_v61, %v1256_v25  ;;  %v1181_v28 = vunpack.c.l.bf16 %v3904_v45  ;;  %v776_v15 = vpop.permute.xlu1 %775  ;;  %2782 = vmatprep.subr.bf16.mxu1 %v3904_v45  ;;  %v1186_v9 = vunpack.c.h.bf16 %v3904_v45 }
 0x1a2   :  { %5059 = vst [vmem:[#allocation50_spill] sm:$0xff] %v3900_v44  ;;  %5060 = vst [vmem:[#allocation51_spill] sm:$0xff] %v3902_v42  ;;  %2784 = vmatpush1.bf16.msra.mxu1 %v3625_v50  ;;  %v3916_v62 = vpop.permute.xlu0 %945  ;;  %v789_v12 = vsel %vm781_vm1, %v3462_v17, %v776_v15 }
 0x1a3   :  { %5061 = vst [vmem:[#allocation52_spill] sm:$0xff] %v3906_v40  ;;  %5062 = vst [vmem:[#allocation53_spill] sm:$0xff] %v3908_v57  ;;  %v3920_v20 = vsub.f32 %v783_v35, %v1181_v28  ;;  %2786 = vmatprep.subr.bf16.mxu1 %v3699_v53  ;;  %v3923_v61 = vsub.f32 %v788_v0, %v1186_v9  ;;  %v1117_v9 = vld [vmem:[%s4929_s4] sm:$0xff] }
 0x1a4   :  { %v1119_v36 = vpack.c.bf16 %v1117_v9, %v1117_v9 }
 0x1a5   :  { %5063 = vst [vmem:[#allocation54_spill] sm:$0xff] %v3920_v20  ;;  %5064 = vst [vmem:[#allocation55_spill] sm:$0xff] %v3923_v61  ;;  %v821_v32 = vpop.permute.xlu1 %820  ;;  %v790_v20 = vsel %vm781_vm1, %v776_v15, %v3641_v59 }
 0x1a6   :  { %2788 = vmatpush1.bf16.msra.mxu1 %v3687_v49  ;;  %v3928_v55 = vpop.permute.xlu0 %957  ;;  %v3956_v40 = vunpack.c.l.bf16 %v1119_v36 }
 0x1a7   :  { %2790 = vmatprep.subr.bf16.mxu1 %v3732_v10 }
 0x1a8   :  { %v3961_v22 = vsub.f32 %v1117_v9, %v3956_v40  ;;  %v834_v9 = vsel %vm826_vm2, %v3478_v19, %v821_v32 }
 0x1a9   :  { %v866_v25 = vpop.permute.xlu1 %865 }
 0x1aa   :  { %2792 = vmatpush1.bf16.msra.mxu1 %v3721_v7  ;;  %v3933_v28 = vpop.permute.xlu0 %990 }
 0x1ab   :  { %2794 = vmatprep.subr.bf16.mxu1 %v3762_v52 }
 0x1ad   :  { %v3935_v35 = vpop.permute.xlu1 %910 }
 0x1ae   :  { %2796 = vmatpush1.bf16.msra.mxu1 %v3751_v3  ;;  %v3945_v47 = vpop.permute.xlu0 %1002  ;;  %v924_v49 = vsel %vm916_vm4, %v3510_v23, %v3935_v35 }
 0x1af   :  { %2798 = vmatprep.subr.bf16.mxu1 %v3791_v58 }
 0x1b1   :  { %v3939_v0 = vpop.permute.xlu1 %955 }
 0x1b2   :  { %2800 = vmatpush1.bf16.msra.mxu1 %v3782_v31  ;;  %v3952_v44 = vpop.permute.xlu0 %1035 }
 0x1b3   :  { %2802 = vmatprep.subr.bf16.mxu1 %v3823_v56 }
 0x1b5   :  { %v3948_v41 = vpop.permute.xlu1 %1000 }
 0x1b6   :  { %2804 = vmatpush1.bf16.msra.mxu1 %v3814_v48 }
 0x1b7   :  { %2806 = vmatprep.subr.bf16.mxu1 %v3852_v13 }
 0x1b9   :  { %v3954_v42 = vpop.permute.xlu1 %1045 }
 0x1ba   :  { %2808 = vmatpush1.bf16.msra.mxu1 %v3843_v51  ;;  %v3971_v51 = vpop.permute.xlu0 %1047 }
 0x1bb   :  { %2810 = vmatprep.subr.bf16.mxu1 %v3881_v29 }
 0x1bd   :  { %v764_v57 = vpop.permute.xlu1 %763 }
 0x1be   :  { %v784_v61 = vsel %vm781_vm1, %v762_v30, %v764_v57  ;;  %v785_v36 = vsel %vm781_vm1, %v764_v57, %v3630_v54  ;;  %2812 = vmatpush1.bf16.msra.mxu1 %v3875_v2  ;;  %v835_v57 = vsel %vm826_vm2, %v821_v32, %v3656_v4  ;;  %v879_v32 = vsel %vm871_vm3, %v3494_v21, %v866_v25 }
 0x1bf   :  { %v1132_v29 = vpack.c.bf16 %v789_v12, %v784_v61  ;;  %v1133_v13 = vpack.c.bf16 %v790_v20, %v785_v36  ;;  %2814 = vmatprep.subr.bf16.mxu1 %v3437_v14 }
 0x1c1   :  { %v1182_v17 = vunpack.c.l.bf16 %v1132_v29  ;;  %v1183_v48 = vunpack.c.l.bf16 %v1133_v13  ;;  %v1187_v56 = vunpack.c.h.bf16 %v1132_v29  ;;  %v809_v15 = vpop.permute.xlu1 %808  ;;  %2917 = vmatprep.subr.bf16.mxu0 %v1133_v13  ;;  %1418 = vmatmul.mubr.f32.vlgmr.msra.gmra.mrb[4].mxu1 %v3961_v22  ;;  %v1188_v30 = vunpack.c.h.bf16 %v1133_v13 }
 0x1c2   :  { %v829_v2 = vsel %vm826_vm2, %v3682_v46, %v809_v15  ;;  %v830_v31 = vsel %vm826_vm2, %v809_v15, %v3650_v63  ;;  %2816 = vmatpush1.bf16.msra.mxu1 %v3448_v16  ;;  %2919 = vmatpush1.bf16.msra.mxu0 %v1132_v29  ;;  %v880_v15 = vsel %vm871_vm3, %v866_v25, %v3668_v5 }
 0x1c3   :  { %v3984_v19 = vsub.f32 %v784_v61, %v1182_v17  ;;  %v3986_v58 = vsub.f32 %v785_v36, %v1183_v48  ;;  %v3988_v3 = vsub.f32 %v789_v12, %v1187_v56  ;;  %v1137_v52 = vpack.c.bf16 %v834_v9, %v829_v2  ;;  %2818 = vmatprep.subr.bf16.mxu1 %v1133_v13  ;;  %v3998_v61 = vpop.permute.xlu0 %1080 }
 0x1c4   :  { %v1138_v7 = vpack.c.bf16 %v835_v57, %v830_v31  ;;  %2727 = vmatprep.mubr.msk.f32.mxu1 %vm75_vm0, %v3558_v34  ;;  %v3994_v46 = vsub.f32 %v790_v20, %v1188_v30 }
 0x1c5   :  { %5065 = vst [vmem:[#allocation56_spill] sm:$0xff] %v3984_v19  ;;  %v1192_v48 = vunpack.c.l.bf16 %v1137_v52  ;;  %v1197_v12 = vunpack.c.h.bf16 %v1137_v52  ;;  %v854_v13 = vpop.permute.xlu1 %853 }
 0x1c6   :  { %v1193_v36 = vunpack.c.l.bf16 %v1138_v7  ;;  %v874_v21 = vsel %vm871_vm3, %v3714_v1, %v854_v13  ;;  %v875_v17 = vsel %vm871_vm3, %v854_v13, %v3662_v11  ;;  %2921 = vmatprep.subr.bf16.mxu0 %v1138_v7  ;;  %2820 = vmatpush1.bf16.msra.mxu1 %v1132_v29  ;;  %v925_v1 = vsel %vm916_vm4, %v3935_v35, %v3895_v27 }
 0x1c7   :  { %v4008_v25 = vsub.f32 %v829_v2, %v1192_v48  ;;  %v4010_v30 = vsub.f32 %v834_v9, %v1197_v12  ;;  %v1142_v56 = vpack.c.bf16 %v879_v32, %v874_v21  ;;  %v1143_v10 = vpack.c.bf16 %v880_v15, %v875_v17  ;;  %2923 = vmatpush1.bf16.msra.mxu0 %v1137_v52 }
 0x1c8   :  { %v4018_v13 = vsub.f32 %v830_v31, %v1193_v36  ;;  %2822 = vmatprep.subr.bf16.mxu1 %v1138_v7  ;;  %v1198_v29 = vunpack.c.h.bf16 %v1138_v7  ;;  %v4028_v36 = vpop.permute.xlu0 %1092 }
 0x1c9   :  { %5066 = vst [vmem:[#allocation57_spill] sm:$0xff] %v4008_v25  ;;  %5067 = vst [vmem:[#allocation58_spill] sm:$0xff] %v4010_v30  ;;  %v1202_v9 = vunpack.c.l.bf16 %v1142_v56  ;;  %v1203_v48 = vunpack.c.l.bf16 %v1143_v10  ;;  %v1207_v12 = vunpack.c.h.bf16 %v1142_v56  ;;  %v899_v20 = vpop.permute.xlu1 %898  ;;  %2925 = vmatprep.subr.bf16.mxu0 %v1143_v10  ;;  %v1208_v31 = vunpack.c.h.bf16 %v1143_v10 }
 0x1ca   :  { %v919_v53 = vsel %vm916_vm4, %v3742_v37, %v899_v20  ;;  %v920_v23 = vsel %vm916_vm4, %v899_v20, %v3674_v18  ;;  %2824 = vmatpush1.bf16.msra.mxu1 %v1137_v52  ;;  %v4026_v35 = vsub.f32 %v835_v57, %v1198_v29  ;;  %v969_v37 = vsel %vm961_vm5, %v3528_v26, %v3939_v0 }
 0x1cb   :  { %v4030_v7 = vsub.f32 %v874_v21, %v1202_v9  ;;  %v4032_v2 = vsub.f32 %v875_v17, %v1203_v48  ;;  %v4034_v25 = vsub.f32 %v879_v32, %v1207_v12  ;;  %v1147_v30 = vpack.c.bf16 %v924_v49, %v919_v53  ;;  %2927 = vmatpush1.bf16.msra.mxu0 %v1142_v56 }
 0x1cc   :  { %v1148_v19 = vpack.c.bf16 %v925_v1, %v920_v23  ;;  %2826 = vmatprep.subr.bf16.mxu1 %v1143_v10  ;;  %v4041_v57 = vsub.f32 %v880_v15, %v1208_v31  ;;  %v970_v21 = vsel %vm961_vm5, %v3939_v0, %v3928_v55  ;;  %v1014_v32 = vsel %vm1006_vm6, %v3553_v33, %v3948_v41  ;;  %v4066_v15 = vpop.permute.xlu0 %779 }
 0x1cd   :  { %5068 = vst [vmem:[#allocation59_spill] sm:$0xff] %v4030_v7  ;;  %v1212_v17 = vunpack.c.l.bf16 %v1147_v30  ;;  %v1217_v20 = vunpack.c.h.bf16 %v1147_v30  ;;  %v944_v29 = vpop.permute.xlu1 %943 }
 0x1ce   :  { %v1213_v9 = vunpack.c.l.bf16 %v1148_v19  ;;  %v964_v26 = vsel %vm961_vm5, %v3773_v6, %v944_v29  ;;  %v965_v10 = vsel %vm961_vm5, %v944_v29, %v3916_v62  ;;  %2929 = vmatprep.subr.bf16.mxu0 %v1148_v19  ;;  %2828 = vmatpush1.bf16.msra.mxu1 %v1142_v56  ;;  %v1015_v6 = vsel %vm1006_vm6, %v3948_v41, %v3945_v47 }
 0x1cf   :  { %v4054_v48 = vsub.f32 %v919_v53, %v1212_v17  ;;  %v4056_v0 = vsub.f32 %v924_v49, %v1217_v20  ;;  %v1152_v12 = vpack.c.bf16 %v969_v37, %v964_v26  ;;  %v1153_v31 = vpack.c.bf16 %v970_v21, %v965_v10  ;;  %2931 = vmatpush1.bf16.msra.mxu0 %v1147_v30 }
 0x1d0   :  { %v4064_v29 = vsub.f32 %v920_v23, %v1213_v9  ;;  %2830 = vmatprep.subr.bf16.mxu1 %v1148_v19  ;;  %v1218_v56 = vunpack.c.h.bf16 %v1148_v19 }
 0x1d1   :  { %5069 = vst [vmem:[#allocation60_spill] sm:$0xff] %v4054_v48  ;;  %5070 = vst [vmem:[#allocation61_spill] sm:$0xff] %v4056_v0  ;;  %v1222_v53 = vunpack.c.l.bf16 %v1152_v12  ;;  %v1223_v17 = vunpack.c.l.bf16 %v1153_v31  ;;  %v1227_v20 = vunpack.c.h.bf16 %v1152_v12  ;;  %v989_v52 = vpop.permute.xlu1 %988  ;;  %2933 = vmatprep.subr.bf16.mxu0 %v1153_v31  ;;  %v1228_v19 = vunpack.c.h.bf16 %v1153_v31 }
 0x1d2   :  { %v1009_v33 = vsel %vm1006_vm6, %v3805_v60, %v989_v52  ;;  %v1010_v41 = vsel %vm1006_vm6, %v989_v52, %v3933_v28  ;;  %2832 = vmatpush1.bf16.msra.mxu1 %v1147_v30  ;;  %v4074_v23 = vsub.f32 %v925_v1, %v1218_v56  ;;  %v1059_v0 = vsel %vm1051_vm7, %v3580_v38, %v3954_v42 }
 0x1d3   :  { %v4076_v9 = vsub.f32 %v964_v26, %v1222_v53  ;;  %v4078_v7 = vsub.f32 %v965_v10, %v1223_v17  ;;  %v4080_v49 = vsub.f32 %v969_v37, %v1227_v20  ;;  %v1157_v48 = vpack.c.bf16 %v1014_v32, %v1009_v33  ;;  %2935 = vmatpush1.bf16.msra.mxu0 %v1152_v12  ;;  %v4100_v17 = vpop.permute.xlu0 %824 }
 0x1d4   :  { %v1158_v60 = vpack.c.bf16 %v1015_v6, %v1010_v41  ;;  %2834 = vmatprep.subr.bf16.mxu1 %v1153_v31  ;;  %v4087_v1 = vsub.f32 %v970_v21, %v1228_v19  ;;  %v1060_v52 = vsel %vm1051_vm7, %v3954_v42, %v3971_v51 }
 0x1d5   :  { %5071 = vst [vmem:[#allocation62_spill] sm:$0xff] %v4076_v9  ;;  %5072 = vst [vmem:[#allocation63_spill] sm:$0xff] %v4080_v49  ;;  %v1232_v26 = vunpack.c.l.bf16 %v1157_v48  ;;  %v1237_v10 = vunpack.c.h.bf16 %v1157_v48  ;;  %v1034_v56 = vpop.permute.xlu1 %1033 }
 0x1d6   :  { %v1233_v53 = vunpack.c.l.bf16 %v1158_v60  ;;  %v1054_v38 = vsel %vm1051_vm7, %v3834_v24, %v1034_v56  ;;  %v1055_v31 = vsel %vm1051_vm7, %v1034_v56, %v3952_v44  ;;  %2937 = vmatprep.subr.bf16.mxu0 %v1158_v60  ;;  %2836 = vmatpush1.bf16.msra.mxu1 %v1152_v12  ;;  %v1238_v24 = vunpack.c.h.bf16 %v1158_v60 }
 0x1d7   :  { %v4102_v42 = vsub.f32 %v1009_v33, %v1232_v26  ;;  %v4104_v20 = vsub.f32 %v1014_v32, %v1237_v10  ;;  %v1162_v19 = vpack.c.bf16 %v1059_v0, %v1054_v38  ;;  %v1163_v37 = vpack.c.bf16 %v1060_v52, %v1055_v31  ;;  %2939 = vmatpush1.bf16.msra.mxu0 %v1157_v48  ;;  %v870_v56 = vpop.permute.xlu0 %869 }
 0x1d8   :  { %v4106_v30 = vsub.f32 %v1010_v41, %v1233_v53  ;;  %2838 = vmatprep.subr.bf16.mxu1 %v1158_v60  ;;  %v4110_v33 = vsub.f32 %v1015_v6, %v1238_v24 }
 0x1d9   :  { %v1242_v12 = vunpack.c.l.bf16 %v1162_v19  ;;  %v1243_v9 = vunpack.c.l.bf16 %v1163_v37  ;;  %v1247_v49 = vunpack.c.h.bf16 %v1162_v19  ;;  %v1079_v21 = vpop.permute.xlu1 %1078  ;;  %2941 = vmatprep.subr.bf16.mxu0 %v1163_v37  ;;  %v1248_v32 = vunpack.c.h.bf16 %v1163_v37 }
 0x1da   :  { %2840 = vmatpush1.bf16.msra.mxu1 %v1157_v48  ;;  %v1099_v6 = vsel %vm1096_vm8, %v3866_v39, %v1079_v21 }
 0x1db   :  { %v4112_v26 = vsub.f32 %v1054_v38, %v1242_v12  ;;  %v4114_v10 = vsub.f32 %v1055_v31, %v1243_v9  ;;  %v4116_v41 = vsub.f32 %v1059_v0, %v1247_v49  ;;  %2943 = vmatpush1.bf16.msra.mxu0 %v1162_v19  ;;  %2842 = vmatprep.subr.bf16.mxu1 %v1163_v37 }
 0x1dc   :  { %v4120_v53 = vsub.f32 %v1060_v52, %v1248_v32  ;;  %v1100_v9 = vsel %vm1096_vm8, %v1079_v21, %v3998_v61 }
 0x1dd   :  { %5073 = vst [vmem:[#allocation64_spill] sm:$0xff] %v4112_v26  ;;  %5074 = vst [vmem:[#allocation65_spill] sm:$0xff] %v4116_v41  ;;  %v1091_v38 = vpop.permute.xlu1 %1090  ;;  %v3226_v41 = vmov 0.0|0.0  }
 0x1de   :  { %v1104_v0 = vsel %vm1096_vm8, %v3601_v43, %v1091_v38  ;;  %v1105_v49 = vsel %vm1096_vm8, %v1091_v38, %v4028_v36  ;;  %2844 = vmatpush1.bf16.msra.mxu1 %v1162_v19  ;;  %v791_v43 = vsel %vm781_vm1, %v3641_v59, %v4066_v15  ;;  %v915_v19 = vpop.permute.xlu0 %914  ;;  %v5075_v59 = vld [vmem:[#allocation8_spill] sm:$0xff] }
 0x1df   :  { %v1167_v37 = vpack.c.bf16 %v1104_v0, %v1099_v6  ;;  %v1168_v31 = vpack.c.bf16 %v1105_v49, %v1100_v9  ;;  %v4149_v15 = vpack.c.bf16 %v5075_v59, %v3416_v8 }
 0x1e1   :  { %v1252_v24 = vunpack.c.l.bf16 %v1167_v37  ;;  %v1257_v12 = vunpack.c.h.bf16 %v1167_v37  ;;  %v1258_v32 = vunpack.c.h.bf16 %v1168_v31  ;;  %2846 = vmatprep.subr.bf16.mxu1 %v1168_v31  ;;  %2945 = vmatprep.subr.bf16.mxu0 %v1168_v31  ;;  %v768_v39 = vpop.permute.xlu1 %767  ;;  %v1253_v48 = vunpack.c.l.bf16 %v1168_v31 }
 0x1e2   :  { %v786_v21 = vsel %vm781_vm1, %v3630_v54, %v768_v39  ;;  %2848 = vmatpush1.bf16.msra.mxu1 %v1167_v37  ;;  %2947 = vmatpush1.bf16.msra.mxu0 %v1167_v37 }
 0x1e3   :  { %v4139_v38 = vsub.f32 %v1099_v6, %v1252_v24  ;;  %v4141_v52 = vsub.f32 %v1104_v0, %v1257_v12  ;;  %v4143_v60 = vsub.f32 %v1105_v49, %v1258_v32  ;;  %v1134_v26 = vpack.c.bf16 %v791_v43, %v786_v21  ;;  %2849 = vmatprep.subr.bf16.mxu1 %v3226_v41 }
 0x1e4   :  { %2948 = vmatprep.subr.bf16.mxu0 %v3226_v41  ;;  %v4151_v54 = vsub.f32 %v1100_v9, %v1253_v48  ;;  %v836_v49 = vsel %vm826_vm2, %v3656_v4, %v4100_v17  ;;  %v960_v4 = vpop.permute.xlu0 %959 }
 0x1e5   :  { %v1184_v37 = vunpack.c.l.bf16 %v1134_v26  ;;  %v1189_v0 = vunpack.c.h.bf16 %v1134_v26  ;;  %v813_v31 = vpop.permute.xlu1 %812  ;;  %1489 = vmatmul.mubr.f32.vlgmr.msra.gmra.mrb[6].mxu1 %v3961_v22  ;;  %1704 = vmatmul.mubr.f32.vlgmr.msra.gmra.mrb[4].mxu0 %v3956_v40 }
 0x1e6   :  { %v831_v24 = vsel %vm826_vm2, %v3650_v63, %v813_v31  ;;  %2851 = vmatpush1.bf16.msra.mxu1 %v4149_v15  ;;  %2950 = vmatpush1.bf16.msra.mxu0 %v4149_v15  ;;  %v5076_v63 = vld [vmem:[#allocation9_spill] sm:$0xff] }
 0x1e7   :  { %v4166_v9 = vsub.f32 %v786_v21, %v1184_v37  ;;  %v4168_v12 = vsub.f32 %v791_v43, %v1189_v0  ;;  %v1139_v32 = vpack.c.bf16 %v836_v49, %v831_v24  ;;  %2852 = vmatprep.subr.bf16.mxu1 %v3226_v41  ;;  %2951 = vmatprep.subr.bf16.mxu0 %v3226_v41 }
 0x1e8   :  { %2728 = vmatprep.mubr.msk.f32.mxu1 %vm75_vm0, %v3558_v34  ;;  %2731 = vmatprep.mubr.msk.f32.mxu0 %vm75_vm0, %v5076_v63  ;;  %v881_v43 = vsel %vm871_vm3, %v3668_v5, %v870_v56 }
 0x1e9   :  { %v1194_v39 = vunpack.c.l.bf16 %v1139_v32  ;;  %v1199_v21 = vunpack.c.h.bf16 %v1139_v32  ;;  %v858_v59 = vpop.permute.xlu1 %857 }
 0x1ea   :  { %v876_v37 = vsel %vm871_vm3, %v3662_v11, %v858_v59  ;;  %2854 = vmatpush1.bf16.msra.mxu1 %v1134_v26  ;;  %2953 = vmatpush1.bf16.msra.mxu0 %v1134_v26  ;;  %v926_v11 = vsel %vm916_vm4, %v3895_v27, %v915_v19  ;;  %v1005_v26 = vpop.permute.xlu0 %1004 }
 0x1eb   :  { %v4182_v0 = vsub.f32 %v831_v24, %v1194_v39  ;;  %v4184_v34 = vsub.f32 %v836_v49, %v1199_v21  ;;  %v1144_v31 = vpack.c.bf16 %v881_v43, %v876_v37  ;;  %2855 = vmatprep.subr.bf16.mxu1 %v3226_v41  ;;  %2954 = vmatprep.subr.bf16.mxu0 %v3226_v41 }
 0x1ed   :  { %v3054_v17 = vpack.c.bf16 %v4184_v34, %v4182_v0  ;;  %v1204_v6 = vunpack.c.l.bf16 %v1144_v31  ;;  %v1209_v48 = vunpack.c.h.bf16 %v1144_v31  ;;  %v903_v5 = vpop.permute.xlu1 %902 }
 0x1ee   :  { %v921_v56 = vsel %vm916_vm4, %v3674_v18, %v903_v5  ;;  %2857 = vmatpush1.bf16.msra.mxu1 %v1139_v32  ;;  %2956 = vmatpush1.bf16.msra.mxu0 %v1139_v32  ;;  %v971_v18 = vsel %vm961_vm5, %v3928_v55, %v960_v4 }
 0x1ef   :  { %v4194_v49 = vsub.f32 %v876_v37, %v1204_v6  ;;  %v4196_v24 = vsub.f32 %v881_v43, %v1209_v48  ;;  %v1149_v39 = vpack.c.bf16 %v926_v11, %v921_v56  ;;  %2858 = vmatprep.subr.bf16.mxu1 %v3226_v41  ;;  %2957 = vmatprep.subr.bf16.mxu0 %v3226_v41  ;;  %v1050_v37 = vpop.permute.xlu0 %1049 }
 0x1f1   :  { %v1214_v59 = vunpack.c.l.bf16 %v1149_v39  ;;  %v1219_v27 = vunpack.c.h.bf16 %v1149_v39  ;;  %v948_v19 = vpop.permute.xlu1 %947 }
 0x1f2   :  { %v966_v6 = vsel %vm961_vm5, %v3916_v62, %v948_v19  ;;  %2860 = vmatpush1.bf16.msra.mxu1 %v1144_v31  ;;  %2959 = vmatpush1.bf16.msra.mxu0 %v1144_v31  ;;  %v1016_v62 = vsel %vm1006_vm6, %v3945_v47, %v1005_v26  ;;  %v1061_v19 = vsel %vm1051_vm7, %v3971_v51, %v1050_v37  ;;  %v5077_v51 = vld [vmem:[#allocation7_spill] sm:$0xff] }
 0x1f3   :  { %v4206_v48 = vsub.f32 %v921_v56, %v1214_v59  ;;  %v4208_v32 = vsub.f32 %v926_v11, %v1219_v27  ;;  %v1154_v43 = vpack.c.bf16 %v971_v18, %v966_v6  ;;  %2861 = vmatprep.subr.bf16.mxu1 %v3226_v41  ;;  %2960 = vmatprep.subr.bf16.mxu0 %v3226_v41  ;;  %v1997_v11 = vld [vmem:[%s4930_s5] sm:$0xff] }
 0x1f4   :  { %2000 = vperm.xlu1 %3210, %v1997_v11   ;;  %v1173_v11 = vunpack.c.l.bf16 %v3437_v14 }
 0x1f5   :  { %v1224_v21 = vunpack.c.l.bf16 %v1154_v43  ;;  %v1229_v55 = vunpack.c.h.bf16 %v1154_v43  ;;  %v993_v4 = vpop.permute.xlu1 %992 }
 0x1f6   :  { %v1011_v31 = vsel %vm1006_vm6, %v3933_v28, %v993_v4  ;;  %2863 = vmatpush1.bf16.msra.mxu1 %v1149_v39  ;;  %2962 = vmatpush1.bf16.msra.mxu0 %v1149_v39  ;;  %v1263_v5 = vsub.f32 %v5077_v51, %v1173_v11  ;;  %v3212_v51 = vld [vmem:[%s4928_s1 + $0x10] sm:$0xff] }
 0x1f7   :  { %v4221_v56 = vsub.f32 %v966_v6, %v1224_v21  ;;  %v4223_v59 = vsub.f32 %v971_v18, %v1229_v55  ;;  %v1159_v27 = vpack.c.bf16 %v1016_v62, %v1011_v31  ;;  %2864 = vmatprep.subr.bf16.mxu1 %v3226_v41  ;;  %2963 = vmatprep.subr.bf16.mxu0 %v3226_v41  ;;  %v1095_v18 = vpop.permute.xlu0 %1094 }
 0x1f9   :  { %v1234_v28 = vunpack.c.l.bf16 %v1159_v27  ;;  %v1239_v26 = vunpack.c.h.bf16 %v1159_v27  ;;  %v1038_v39 = vpop.permute.xlu1 %1037 }
 0x1fa   :  { %v1056_v21 = vsel %vm1051_vm7, %v3952_v44, %v1038_v39  ;;  %2866 = vmatpush1.bf16.msra.mxu1 %v1154_v43  ;;  %2965 = vmatpush1.bf16.msra.mxu0 %v1154_v43  ;;  %v1178_v43 = vunpack.c.h.bf16 %v3437_v14  ;;  %v1172_v14 = vunpack.c.l.bf16 %v3448_v16 }
 0x1fb   :  { %v4233_v6 = vsub.f32 %v1011_v31, %v1234_v28  ;;  %v4235_v55 = vsub.f32 %v1016_v62, %v1239_v26  ;;  %v1164_v4 = vpack.c.bf16 %v1061_v19, %v1056_v21  ;;  %2867 = vmatprep.subr.bf16.mxu1 %v3226_v41  ;;  %2966 = vmatprep.subr.bf16.mxu0 %v3226_v41 }
 0x1fc   :  { %v1106_v31 = vsel %vm1096_vm8, %v4028_v36, %v1095_v18  ;;  %v1177_v36 = vunpack.c.h.bf16 %v3448_v16  ;;  %v5078_v16 = vld [vmem:[#allocation6_spill] sm:$0xff] }
 0x1fd   :  { %v1244_v37 = vunpack.c.l.bf16 %v1164_v4  ;;  %v1249_v47 = vunpack.c.h.bf16 %v1164_v4  ;;  %v1083_v44 = vpop.permute.xlu1 %1082  ;;  %v1262_v11 = vsub.f32 %v5078_v16, %v1172_v14  ;;  %v5081_v14 = vpack.c.bf16 %v3994_v46, %v3986_v58  ;;  %v5086_v58 = vld [vmem:[#allocation12_spill] sm:$0xff]  ;;  %v5087_v46 = vld [vmem:[#allocation58_spill] sm:$0xff] }
 0x1fe   :  { %v1101_v62 = vsel %vm1096_vm8, %v3998_v61, %v1083_v44  ;;  %2869 = vmatpush1.bf16.msra.mxu1 %v1159_v27  ;;  %2968 = vmatpush1.bf16.msra.mxu0 %v1159_v27  ;;  %v1267_v44 = vsub.f32 %v3212_v51, %v1177_v36  ;;  %v5088_v36 = vld [vmem:[#allocation57_spill] sm:$0xff] }
 0x1ff   :  { %v4247_v28 = vsub.f32 %v1056_v21, %v1244_v37  ;;  %v4249_v26 = vsub.f32 %v1061_v19, %v1249_v47  ;;  %v1169_v39 = vpack.c.bf16 %v1106_v31, %v1101_v62  ;;  %2870 = vmatprep.subr.bf16.mxu1 %v3226_v41  ;;  %2969 = vmatprep.subr.bf16.mxu0 %v3226_v41  ;;  %v3211_v47 = vld [vmem:[%s4928_s1 + $0x18] sm:$0xff] }
 0x200   :  { %v1268_v19 = vsub.f32 %v3211_v47, %v1178_v43  ;;  %v5098_v51 = vld [vmem:[#allocation61_spill] sm:$0xff] }
 0x201   :  { %v3069_v61 = vpack.c.bf16 %v4249_v26, %v4247_v28  ;;  %v1254_v18 = vunpack.c.l.bf16 %v1169_v39  ;;  %v1259_v27 = vunpack.c.h.bf16 %v1169_v39 }
 0x202   :  { %2872 = vmatpush1.bf16.msra.mxu1 %v1164_v4  ;;  %2971 = vmatpush1.bf16.msra.mxu0 %v1164_v4  ;;  %v3011_v47 = vpack.c.bf16 %v1268_v19, %v1263_v5  ;;  %v5079_v4 = vld [vmem:[#allocation4_spill] sm:$0xff]  ;;  %v5093_v19 = vld [vmem:[#allocation59_spill] sm:$0xff] }
 0x203   :  { %v4261_v21 = vsub.f32 %v1101_v62, %v1254_v18  ;;  %v4263_v37 = vsub.f32 %v1106_v31, %v1259_v27  ;;  %2873 = vmatprep.subr.bf16.mxu1 %v3226_v41  ;;  %2972 = vmatprep.subr.bf16.mxu0 %v3226_v41  ;;  %v3013_v31 = vpack.c.bf16 %v1267_v44, %v1262_v11  ;;  %v5080_v62 = vld [vmem:[#allocation5_spill] sm:$0xff]  ;;  %v5090_v27 = vld [vmem:[#allocation18_spill] sm:$0xff]  ;;  %v5099_v44 = vld [vmem:[#allocation60_spill] sm:$0xff] }
 0x204   :  { %v5089_v18 = vpack.c.bf16 %v5087_v46, %v5088_v36  ;;  %v5094_v16 = vpack.c.bf16 %v4034_v25, %v5093_v19  ;;  %v5097_v11 = vld [vmem:[#allocation22_spill] sm:$0xff]  ;;  %v5103_v25 = vld [vmem:[#allocation28_spill] sm:$0xff]  ;;  %v1170_v46 = vunpack.c.l.bf16 %v5080_v62 }
 0x205   :  { %v3072_v43 = vpack.c.bf16 %v4263_v37, %v4261_v21  ;;  %v3214_v19 = vld [vmem:[%s4928_s1] sm:$0xff] }
 0x206   :  { %2875 = vmatpush1.bf16.msra.mxu1 %v1169_v39  ;;  %2974 = vmatpush1.bf16.msra.mxu0 %v1169_v39  ;;  %v5084_v39 = vld [vmem:[#allocation13_spill] sm:$0xff] }
 0x207   :  { %2877 = vmatprep.subr.bf16.mxu1 %v5079_v4  ;;  %3012 = vmatprep.subr.bf16.mxu0 %v3011_v47  ;;  %v5100_v47 = vpack.c.bf16 %v5098_v51, %v5099_v44 }
 0x209   :  { %1560 = vmatmul.mubr.f32.vlgmr.msra.gmra.mrb[8].mxu1 %v3961_v22  ;;  %1775 = vmatmul.mubr.f32.vlgmr.msra.gmra.mrb[6].mxu0 %v3956_v40  ;;  %v5082_v22 = vld [vmem:[#allocation56_spill] sm:$0xff] }
 0x20a   :  { %2879 = vmatpush1.bf16.msra.mxu1 %v5080_v62  ;;  %3014 = vmatpush1.bf16.msra.mxu0 %v3013_v31  ;;  %v5083_v5 = vpack.c.bf16 %v3988_v3, %v5082_v22  ;;  %v5092_v3 = vld [vmem:[#allocation16_spill] sm:$0xff]  ;;  %v5104_v31 = vld [vmem:[#allocation63_spill] sm:$0xff] }
 0x20b   :  { %2881 = vmatprep.subr.bf16.mxu1 %v3904_v45  ;;  %3016 = vmatprep.subr.bf16.mxu0 %v5081_v14  ;;  %v5085_v45 = vpack.c.bf16 %v4026_v35, %v4018_v13  ;;  %v5095_v13 = vld [vmem:[#allocation24_spill] sm:$0xff]  ;;  %v5096_v35 = vpack.c.bf16 %v4074_v23, %v4064_v29  ;;  %v5105_v14 = vld [vmem:[#allocation62_spill] sm:$0xff]  ;;  %v5108_v23 = vpack.c.bf16 %v4110_v33, %v4106_v30  ;;  %v1175_v30 = vunpack.c.h.bf16 %v5080_v62  ;;  %v5113_v33 = vld [vmem:[#allocation3_spill] sm:$0xff] }
 0x20c   :  { %2733 = vmatprep.mubr.msk.f32.mxu0 %vm75_vm0, %v5076_v63  ;;  %2729 = vmatprep.mubr.msk.f32.mxu1 %vm75_vm0, %v5076_v63  ;;  %v5106_v22 = vpack.c.bf16 %v5104_v31, %v5105_v14  ;;  %v5107_v29 = vld [vmem:[#allocation36_spill] sm:$0xff]  ;;  %v5133_v14 = vld [vmem:[#allocation15_spill] sm:$0xff] }
 0x20e   :  { %2883 = vmatpush1.bf16.msra.mxu1 %v3625_v50  ;;  %3018 = vmatpush1.bf16.msra.mxu0 %v5083_v5  ;;  %v5091_v50 = vpack.c.bf16 %v4041_v57, %v4032_v2  ;;  %v5101_v2 = vld [vmem:[#allocation30_spill] sm:$0xff]  ;;  %v5102_v57 = vpack.c.bf16 %v4087_v1, %v4078_v7  ;;  %v1171_v5 = vunpack.c.l.bf16 %v5079_v4  ;;  %v5110_v7 = vpack.c.bf16 %v4104_v20, %v4102_v42  ;;  %v5115_v42 = vld [vmem:[#allocation65_spill] sm:$0xff]  ;;  %v5116_v20 = vld [vmem:[#allocation64_spill] sm:$0xff] }
 0x20f   :  { %2885 = vmatprep.subr.bf16.mxu1 %v5084_v39  ;;  %3020 = vmatprep.subr.bf16.mxu0 %v5085_v45  ;;  %v1176_v39 = vunpack.c.h.bf16 %v5079_v4  ;;  %v5109_v45 = vld [vmem:[#allocation34_spill] sm:$0xff]  ;;  %v3213_v4 = vld [vmem:[%s4928_s1 + $0x8] sm:$0xff] }
 0x210   :  { %v5111_v1 = vld [vmem:[#allocation42_spill] sm:$0xff]  ;;  %v1261_v36 = vsub.f32 %v5113_v33, %v1171_v5  ;;  %v5137_v5 = vld [vmem:[#allocation23_spill] sm:$0xff] }
 0x211   :  { %v5145_v33 = vld [vmem:[#allocation27_spill] sm:$0xff] }
 0x212   :  { %2887 = vmatpush1.bf16.msra.mxu1 %v5086_v58  ;;  %3022 = vmatpush1.bf16.msra.mxu0 %v5089_v18  ;;  %v5112_v58 = vpack.c.bf16 %v4120_v53, %v4114_v10  ;;  %v1266_v18 = vsub.f32 %v3213_v4, %v1176_v39  ;;  %v5119_v10 = vpack.c.bf16 %v4143_v60, %v4151_v54  ;;  %v5120_v53 = vld [vmem:[#allocation2_spill] sm:$0xff]  ;;  %v5123_v60 = vld [vmem:[#allocation55_spill] sm:$0xff] }
 0x213   :  { %2889 = vmatprep.subr.bf16.mxu1 %v5090_v27  ;;  %3024 = vmatprep.subr.bf16.mxu0 %v5091_v50  ;;  %v5114_v27 = vld [vmem:[#allocation40_spill] sm:$0xff]  ;;  %v5117_v50 = vpack.c.bf16 %v5115_v42, %v5116_v20  ;;  %v1260_v62 = vsub.f32 %v5120_v53, %v1170_v46  ;;  %v5124_v54 = vld [vmem:[#allocation54_spill] sm:$0xff]  ;;  %v5143_v46 = vld [vmem:[#allocation29_spill] sm:$0xff] }
 0x214   :  { %v5125_v44 = vpack.c.bf16 %v5123_v60, %v5124_v54  ;;  %v5151_v20 = vld [vmem:[#allocation33_spill] sm:$0xff]  ;;  %v1174_v60 = vunpack.c.l.bf16 %v4149_v15  ;;  %v1179_v54 = vunpack.c.h.bf16 %v4149_v15 }
 0x215   :  { %v5155_v53 = vld [vmem:[#allocation41_spill] sm:$0xff] }
 0x216   :  { %2891 = vmatpush1.bf16.msra.mxu1 %v5092_v3  ;;  %3026 = vmatpush1.bf16.msra.mxu0 %v5094_v16  ;;  %v5118_v3 = vld [vmem:[#allocation48_spill] sm:$0xff]  ;;  %v1265_v16 = vsub.f32 %v3214_v19, %v1175_v30  ;;  %v5157_v19 = vld [vmem:[#allocation39_spill] sm:$0xff] }
 0x217   :  { %2893 = vmatprep.subr.bf16.mxu1 %v5095_v13  ;;  %3028 = vmatprep.subr.bf16.mxu0 %v5096_v35  ;;  %v2975_v13 = vpack.c.bf16 %v1266_v18, %v1261_v36  ;;  %v5121_v35 = vld [vmem:[#allocation46_spill] sm:$0xff]  ;;  %v5148_v18 = vld [vmem:[#allocation37_spill] sm:$0xff] }
 0x218   :  { %v2977_v51 = vpack.c.bf16 %v1265_v16, %v1260_v62  ;;  %v5146_v36 = vld [vmem:[#allocation26_spill] sm:$0xff] }
 0x219   :  { %v5147_v4 = vpack.c.bf16 %v5145_v33, %v5146_v36  ;;  %v5158_v16 = vld [vmem:[#allocation38_spill] sm:$0xff] }
 0x21a   :  { %2895 = vmatpush1.bf16.msra.mxu1 %v5097_v11  ;;  %3030 = vmatpush1.bf16.msra.mxu0 %v5100_v47  ;;  %v5122_v11 = vpack.c.bf16 %v4141_v52, %v4139_v38  ;;  %v5126_v47 = vmov 0.0   ;;  %v5130_v38 = vld [vmem:[#allocation19_spill] sm:$0xff] }
 0x21b   :  { %2897 = vmatprep.subr.bf16.mxu1 %v5101_v2  ;;  %3032 = vmatprep.subr.bf16.mxu0 %v5102_v57  ;;  %v5127_v2 = vld [vmem:[#allocation11_spill] sm:$0xff]  ;;  %v5128_v57 = vld [vmem:[#allocation10_spill] sm:$0xff] }
 0x21c   :  { %v5129_v52 = vpack.c.bf16 %v5127_v2, %v5128_v57  ;;  %v5164_v2 = vld [vmem:[#allocation44_spill] sm:$0xff] }
 0x21e   :  { %2899 = vmatpush1.bf16.msra.mxu1 %v5103_v25  ;;  %3034 = vmatpush1.bf16.msra.mxu0 %v5106_v22  ;;  %v5131_v25 = vld [vmem:[#allocation17_spill] sm:$0xff]  ;;  %v5134_v22 = vld [vmem:[#allocation14_spill] sm:$0xff] }
 0x21f   :  { %2901 = vmatprep.subr.bf16.mxu1 %v5107_v29  ;;  %3036 = vmatprep.subr.bf16.mxu0 %v5108_v23  ;;  %v5132_v31 = vpack.c.bf16 %v5130_v38, %v5131_v25  ;;  %v5135_v29 = vpack.c.bf16 %v5133_v14, %v5134_v22  ;;  %v5136_v23 = vld [vmem:[#allocation25_spill] sm:$0xff]  ;;  %v5167_v38 = vld [vmem:[#allocation52_spill] sm:$0xff]  ;;  %v3215_v14 = vld [vmem:[%s4928_s1 + $0x20] sm:$0xff] }
 0x220   :  { %v5138_v39 = vpack.c.bf16 %v5136_v23, %v5137_v5  ;;  %v1269_v22 = vsub.f32 %v3215_v14, %v1179_v54  ;;  %v5170_v23 = vld [vmem:[#allocation50_spill] sm:$0xff] }
 0x222   :  { %2903 = vmatpush1.bf16.msra.mxu1 %v5109_v45  ;;  %3038 = vmatpush1.bf16.msra.mxu0 %v5110_v7  ;;  %v5139_v45 = vld [vmem:[#allocation21_spill] sm:$0xff]  ;;  %v5140_v7 = vld [vmem:[#allocation20_spill] sm:$0xff] }
 0x223   :  { %2905 = vmatprep.subr.bf16.mxu1 %v5111_v1  ;;  %3040 = vmatprep.subr.bf16.mxu0 %v5112_v58  ;;  %v5141_v1 = vpack.c.bf16 %v5139_v45, %v5140_v7  ;;  %v5142_v58 = vld [vmem:[#allocation31_spill] sm:$0xff] }
 0x224   :  { %v5144_v30 = vpack.c.bf16 %v5142_v58, %v5143_v46 }
 0x226   :  { %2907 = vmatpush1.bf16.msra.mxu1 %v5114_v27  ;;  %3042 = vmatpush1.bf16.msra.mxu0 %v5117_v50  ;;  %v5149_v27 = vld [vmem:[#allocation35_spill] sm:$0xff]  ;;  %v5152_v50 = vld [vmem:[#allocation32_spill] sm:$0xff] }
 0x227   :  { %2909 = vmatprep.subr.bf16.mxu1 %v5118_v3  ;;  %3044 = vmatprep.subr.bf16.mxu0 %v5119_v10  ;;  %v5150_v42 = vpack.c.bf16 %v5148_v18, %v5149_v27  ;;  %v5153_v3 = vpack.c.bf16 %v5151_v20, %v5152_v50  ;;  %v5154_v10 = vld [vmem:[#allocation43_spill] sm:$0xff] }
 0x228   :  { %v5156_v62 = vpack.c.bf16 %v5154_v10, %v5155_v53 }
 0x22a   :  { %2911 = vmatpush1.bf16.msra.mxu1 %v5121_v35  ;;  %3046 = vmatpush1.bf16.msra.mxu0 %v5122_v11  ;;  %v5160_v35 = vld [vmem:[#allocation49_spill] sm:$0xff]  ;;  %v5161_v11 = vld [vmem:[#allocation47_spill] sm:$0xff] }
 0x22b   :  { %2976 = vmatprep.subr.bf16.mxu1 %v2975_v13  ;;  %v5159_v13 = vpack.c.bf16 %v5157_v19, %v5158_v16 }
 0x22d   :  { %1916 = vmatmul.mubr.f32.vlgmr.msra.gmra.mrb[4].mxu0 %v3956_v40  ;;  %1633 = vmatmul.mubr.f32.vlgmr.msra.gmra.mrb[4].mxu1 %v3956_v40 }
 0x22e   :  { %2978 = vmatpush1.bf16.msra.mxu1 %v2977_v51  ;;  %2732 = vmatprep.mubr.msk.f32.mxu1 %vm75_vm0, %v5076_v63  ;;  %v5162_v51 = vpack.c.bf16 %v5160_v35, %v5161_v11 }
 0x22f   :  { %2980 = vmatprep.subr.bf16.mxu1 %v5125_v44  ;;  %2326 = vmatprep.mubr.f32.mxu0 %v5126_v47  ;;  %v5163_v44 = vld [vmem:[#allocation45_spill] sm:$0xff] }
 0x230   :  { %v5165_v57 = vpack.c.bf16 %v5163_v44, %v5164_v2 }
 0x232   :  { %2982 = vmatpush1.bf16.msra.mxu1 %v5129_v52  ;;  %v5166_v52 = vld [vmem:[#allocation53_spill] sm:$0xff] }
 0x233   :  { %2984 = vmatprep.subr.bf16.mxu1 %v5132_v31  ;;  %v5168_v25 = vpack.c.bf16 %v5166_v52, %v5167_v38  ;;  %v1264_v31 = vsub.f32 %v3416_v8, %v1174_v60  ;;  %v5172_v8 = vpack.c.bf16 %v4168_v12, %v4166_v9  ;;  %v5175_v9 = vpack.c.bf16 %v4223_v59, %v4221_v56 }
 0x234   :  { %v5176_v12 = vpack.c.bf16 %v4235_v55, %v4233_v6 }
 0x235   :  { %v3048_v15 = vpack.c.bf16 %v1269_v22, %v1264_v31 }
 0x236   :  { %2986 = vmatpush1.bf16.msra.mxu1 %v5135_v29  ;;  %v5169_v29 = vld [vmem:[#allocation51_spill] sm:$0xff] }
 0x237   :  { %2988 = vmatprep.subr.bf16.mxu1 %v5138_v39  ;;  %v5171_v5 = vpack.c.bf16 %v5169_v29, %v5170_v23  ;;  %v5173_v39 = vpack.c.bf16 %v4196_v24, %v4194_v49 }
 0x23a   :  { %2990 = vmatpush1.bf16.msra.mxu1 %v5141_v1 }
 0x23b   :  { %2992 = vmatprep.subr.bf16.mxu1 %v5144_v30 }
 0x23e   :  { %2994 = vmatpush1.bf16.msra.mxu1 %v5147_v4  ;;  %v2695_v4 = vld [vmem:[%s4931_s7] sm:$0xff] }
 0x23f   :  { %2996 = vmatprep.subr.bf16.mxu1 %v5150_v42 }
 0x242   :  { %2998 = vmatpush1.bf16.msra.mxu1 %v5153_v3 }
 0x243   :  { %3000 = vmatprep.subr.bf16.mxu1 %v5156_v62 }
 0x246   :  { %3002 = vmatpush1.bf16.msra.mxu1 %v5159_v13 }
 0x247   :  { %3004 = vmatprep.subr.bf16.mxu1 %v5162_v51 }
 0x24a   :  { %3006 = vmatpush1.bf16.msra.mxu1 %v5165_v57 }
 0x24b   :  { %3008 = vmatprep.subr.bf16.mxu1 %v5168_v25 }
 0x24e   :  { %3010 = vmatpush1.bf16.msra.mxu1 %v5171_v5 }
 0x24f   :  { %3047 = vmatprep.subr.bf16.mxu1 %v3226_v41 }
 0x251   :  { %1845 = vmatmul.mubr.f32.vlgmr.msra.gmra.mrb[4].mxu1 %v3956_v40 }
 0x252   :  { %3049 = vmatpush1.bf16.msra.mxu1 %v3048_v15  ;;  %2734 = vmatprep.mubr.msk.f32.mxu1 %vm75_vm0, %v5076_v63  ;;  %v5174_v63 = vpack.c.bf16 %v4208_v32, %v4206_v48 }
 0x253   :  { %3050 = vmatprep.subr.bf16.mxu1 %v3226_v41 }
 0x256   :  { %3052 = vmatpush1.bf16.msra.mxu1 %v5172_v8 }
 0x257   :  { %3053 = vmatprep.subr.bf16.mxu1 %v3226_v41 }
 0x25a   :  { %3055 = vmatpush1.bf16.msra.mxu1 %v3054_v17 }
 0x25b   :  { %3056 = vmatprep.subr.bf16.mxu1 %v3226_v41 }
 0x25e   :  { %3058 = vmatpush1.bf16.msra.mxu1 %v5173_v39 }
 0x25f   :  { %3059 = vmatprep.subr.bf16.mxu1 %v3226_v41 }
 0x262   :  { %3061 = vmatpush1.bf16.msra.mxu1 %v5174_v63 }
 0x263   :  { %3062 = vmatprep.subr.bf16.mxu1 %v3226_v41 }
 0x266   :  { %3064 = vmatpush1.bf16.msra.mxu1 %v5175_v9 }
 0x267   :  { %3065 = vmatprep.subr.bf16.mxu1 %v3226_v41 }
 0x26a   :  { %3067 = vmatpush1.bf16.msra.mxu1 %v5176_v12 }
 0x26b   :  { %3068 = vmatprep.subr.bf16.mxu1 %v3226_v41 }
 0x26e   :  { %3070 = vmatpush1.bf16.msra.mxu1 %v3069_v61 }
 0x26f   :  { %3071 = vmatprep.subr.bf16.mxu1 %v3226_v41 }
 0x272   :  { %3073 = vmatpush1.bf16.msra.mxu1 %v3072_v43 }
 0x273   :  { %v2001_v59 = vpop.permute.xlu1 %2000 }
 0x275   :  { %1987 = vmatmul.mubr.f32.vlgmr.msra.gmra.mrb[10].mxu1 %v3956_v40 }
 0x2b8   :  { %v1490_v17 = vpop.f32.mrb[6].mxu1 }
 0x2b9   :  { %v1492_v0 = vpop.f32.mrb[7].mxu1 }
 0x2dc   :  { %v1561_v34 = vpop.f32.mrb[8].mxu1  ;;  %v1776_v49 = vpop.f32.mrb[6].mxu0 }
 0x2dd   :  { %v1563_v24 = vpop.f32.mrb[9].mxu1  ;;  %v1777_v48 = vadd.f32 %v1776_v49, %v1561_v34  ;;  %v1778_v32 = vpop.f32.mrb[7].mxu0 }
 0x300   :  { %v1917_v56 = vpop.f32.mrb[4].mxu0 }
 0x301   :  { %v3172_v6 = vadd.f32 %v1917_v56, %v1490_v17  ;;  %v1919_v55 = vpop.f32.mrb[5].mxu0 }
 0x302   :  { %v3173_v28 = vadd.f32 %v1919_v55, %v1492_v0 }
 0x303   :  { %v2005_v26 = vadd.f32 %v3172_v6, %v2001_v59 }
 0x304   :  { %v2006_v45 = vadd.f32 %v3173_v28, %v2001_v59 }
 0x305   :  { %v4453_v41 = vmax.f32 %v2005_v26, 0.0 }
 0x306   :  { %v4495_v1 = vmax.f32 %v2006_v45, 0.0  ;;  %v2162_v45 = vld [vmem:[%s4932_s6] sm:$0xff] }
 0x307   :  { %2040 = vrot.lane.b32.xlu0 %v4453_v41, %s3219_s13  ;;  %2022 = vrot.lane.b32.xlu1 %v4453_v41, %s3218_s0 }
 0x30b   :  { %2058 = vrot.lane.b32.xlu0 %v4453_v41, %s3220_s16 }
 0x30f   :  { %2076 = vrot.lane.b32.xlu0 %v4453_v41, %s3221_s17 }
 0x313   :  { %2094 = vrot.lane.b32.xlu0 %v4453_v41, %s3222_s18 }
 0x317   :  { %2112 = vrot.lane.b32.xlu0 %v4453_v41, %s3223_s19 }
 0x31b   :  { %2130 = vrot.lane.b32.xlu0 %v4453_v41, %s3224_s20 }
 0x31f   :  { %2148 = vrot.lane.b32.xlu0 %v4453_v41, %s3225_s21 }
 0x324   :  { %v1846_v40 = vpop.f32.mrb[4].mxu1 }
 0x325   :  { %v2003_v61 = vadd.f32 %v2001_v59, %v1846_v40  ;;  %v1848_v21 = vpop.f32.mrb[5].mxu1 }
 0x326   :  { %v2004_v43 = vadd.f32 %v2001_v59, %v1848_v21 }
 0x327   :  { %v4471_v37 = vmax.f32 %v2003_v61, 0.0 }
 0x328   :  { %v4489_v7 = vmax.f32 %v2004_v43, 0.0 }
 0x329   :  { %2036 = vrot.lane.b32.xlu1 %v4471_v37, %s3219_s13  ;;  %2018 = vrot.lane.b32.xlu0 %v4471_v37, %s3218_s0 }
 0x32d   :  { %2072 = vrot.lane.b32.xlu1 %v4471_v37, %s3221_s17  ;;  %2054 = vrot.lane.b32.xlu0 %v4471_v37, %s3220_s16 }
 0x331   :  { %2108 = vrot.lane.b32.xlu1 %v4471_v37, %s3223_s19  ;;  %2090 = vrot.lane.b32.xlu0 %v4471_v37, %s3222_s18 }
 0x335   :  { %2144 = vrot.lane.b32.xlu1 %v4471_v37, %s3225_s21  ;;  %2126 = vrot.lane.b32.xlu0 %v4471_v37, %s3224_s20 }
 0x339   :  { %2038 = vrot.lane.b32.xlu1 %v4489_v7, %s3219_s13  ;;  %2020 = vrot.lane.b32.xlu0 %v4489_v7, %s3218_s0 }
 0x33d   :  { %2056 = vrot.lane.b32.xlu1 %v4489_v7, %s3220_s16  ;;  %2024 = vrot.lane.b32.xlu0 %v4495_v1, %s3218_s0 }
 0x341   :  { %2074 = vrot.lane.b32.xlu1 %v4489_v7, %s3221_s17  ;;  %2042 = vrot.lane.b32.xlu0 %v4495_v1, %s3219_s13 }
 0x345   :  { %2092 = vrot.lane.b32.xlu1 %v4489_v7, %s3222_s18  ;;  %2060 = vrot.lane.b32.xlu0 %v4495_v1, %s3220_s16 }
 0x348   :  { %v1988_v58 = vpop.f32.mrb[10].mxu1 }
 0x349   :  { %v1996_v46 = vadd.f32 %v1988_v58, %v1777_v48  ;;  %2110 = vrot.lane.b32.xlu1 %v4489_v7, %s3223_s19  ;;  %2078 = vrot.lane.b32.xlu0 %v4495_v1, %s3221_s17  ;;  %v1990_v30 = vpop.f32.mrb[11].mxu1 }
 0x34b   :  { %v2007_v33 = vadd.f32 %v2001_v59, %v1996_v46 }
 0x34d   :  { %2128 = vrot.lane.b32.xlu1 %v4489_v7, %s3224_s20  ;;  %2096 = vrot.lane.b32.xlu0 %v4495_v1, %s3222_s18  ;;  %v2012_v36 = vmax.f32 %v2007_v33, 0.0 }
 0x351   :  { %2146 = vrot.lane.b32.xlu1 %v4489_v7, %s3225_s21  ;;  %2114 = vrot.lane.b32.xlu0 %v4495_v1, %s3223_s19 }
 0x355   :  { %2026 = vrot.lane.b32.xlu1 %v2012_v36, %s3218_s0  ;;  %2132 = vrot.lane.b32.xlu0 %v4495_v1, %s3224_s20 }
 0x359   :  { %2044 = vrot.lane.b32.xlu1 %v2012_v36, %s3219_s13  ;;  %2150 = vrot.lane.b32.xlu0 %v4495_v1, %s3225_s21 }
 0x35d   :  { %2062 = vrot.lane.b32.xlu1 %v2012_v36, %s3220_s16  ;;  %2698 = vperm.xlu0 %3209, %v2695_v4  }
 0x361   :  { %2080 = vrot.lane.b32.xlu1 %v2012_v36, %s3221_s17 }
 0x365   :  { %2098 = vrot.lane.b32.xlu1 %v2012_v36, %s3222_s18 }
 0x369   :  { %2116 = vrot.lane.b32.xlu1 %v2012_v36, %s3223_s19 }
 0x36d   :  { %2134 = vrot.lane.b32.xlu1 %v2012_v36, %s3224_s20 }
 0x371   :  { %2152 = vrot.lane.b32.xlu1 %v2012_v36, %s3225_s21 }
 0x379   :  { %v2041_v18 = vpop.permute.xlu0 %2040  ;;  %v4546_v10 = vpop.permute.xlu1 %2022 }
 0x37d   :  { %v4536_v27 = vpop.permute.xlu0 %2058 }
 0x381   :  { %v4538_v42 = vpop.permute.xlu0 %2076 }
 0x385   :  { %v4540_v20 = vpop.permute.xlu0 %2094 }
 0x389   :  { %v4542_v50 = vpop.permute.xlu0 %2112 }
 0x38d   :  { %v4544_v3 = vpop.permute.xlu0 %2130 }
 0x391   :  { %v4548_v53 = vpop.permute.xlu0 %2148 }
 0x39b   :  { %v2037_v62 = vpop.permute.xlu1 %2036  ;;  %v2019_v19 = vpop.permute.xlu0 %2018 }
 0x39f   :  { %v2073_v16 = vpop.permute.xlu1 %2072  ;;  %v2055_v13 = vpop.permute.xlu0 %2054 }
 0x3a3   :  { %v4550_v35 = vpop.permute.xlu1 %2108  ;;  %v2091_v11 = vpop.permute.xlu0 %2090 }
 0x3a7   :  { %v4552_v51 = vpop.permute.xlu1 %2144  ;;  %v4554_v60 = vpop.permute.xlu0 %2126 }
 0x3ab   :  { %v2039_v54 = vpop.permute.xlu1 %2038  ;;  %v2021_v44 = vpop.permute.xlu0 %2020 }
 0x3ac   :  { %v2028_v2 = vsel %vm781_vm1, %v2019_v19, %v2021_v44  ;;  %v2029_v57 = vsel %vm781_vm1, %v2021_v44, %v4546_v10  ;;  %v2046_v5 = vsel %vm826_vm2, %v2037_v62, %v2039_v54  ;;  %v2047_v15 = vsel %vm826_vm2, %v2039_v54, %v2041_v18 }
 0x3ad   :  { %v4560_v52 = vpack.c.bf16 %v2028_v2, %v4471_v37  ;;  %v4563_v38 = vpack.c.bf16 %v2029_v57, %v4489_v7 }
 0x3af   :  { %v2186_v25 = vunpack.c.l.bf16 %v4560_v52  ;;  %v2190_v31 = vunpack.c.h.bf16 %v4560_v52  ;;  %v2191_v14 = vunpack.c.h.bf16 %v4563_v38  ;;  %v2057_v22 = vpop.permute.xlu1 %2056  ;;  %3075 = vmatprep.subr.bf16.mxu0 %v4563_v38  ;;  %v4569_v29 = vpop.permute.xlu0 %2024  ;;  %v2187_v23 = vunpack.c.l.bf16 %v4563_v38 }
 0x3b0   :  { %v2064_v8 = vsel %vm871_vm3, %v2055_v13, %v2057_v22  ;;  %v2065_v39 = vsel %vm871_vm3, %v2057_v22, %v4536_v27  ;;  %3077 = vmatpush1.bf16.msra.mxu0 %v4560_v52 }
 0x3b1   :  { %v4579_v63 = vsub.f32 %v4471_v37, %v2186_v25  ;;  %v4581_v9 = vsub.f32 %v2028_v2, %v2190_v31  ;;  %v4583_v12 = vsub.f32 %v2029_v57, %v2191_v14  ;;  %v4585_v17 = vpack.c.bf16 %v2064_v8, %v2046_v5 }
 0x3b2   :  { %v4587_v0 = vpack.c.bf16 %v2065_v39, %v2047_v15  ;;  %v4590_v34 = vsub.f32 %v4489_v7, %v2187_v23 }
 0x3b3   :  { %v2194_v24 = vunpack.c.l.bf16 %v4585_v17  ;;  %v2198_v48 = vunpack.c.h.bf16 %v4585_v17  ;;  %v2075_v32 = vpop.permute.xlu1 %2074  ;;  %v4596_v56 = vpop.permute.xlu0 %2042 }
 0x3b4   :  { %v2199_v59 = vunpack.c.h.bf16 %v4587_v0  ;;  %3079 = vmatprep.subr.bf16.mxu0 %v4587_v0  ;;  %v2082_v61 = vsel %vm916_vm4, %v2073_v16, %v2075_v32  ;;  %v2083_v21 = vsel %vm916_vm4, %v2075_v32, %v4538_v42  ;;  %v2195_v7 = vunpack.c.l.bf16 %v4587_v0 }
 0x3b5   :  { %v4600_v6 = vsub.f32 %v2046_v5, %v2194_v24  ;;  %v4602_v55 = vsub.f32 %v2064_v8, %v2198_v48  ;;  %3081 = vmatpush1.bf16.msra.mxu0 %v4585_v17  ;;  %v2048_v58 = vsel %vm826_vm2, %v2041_v18, %v4596_v56  ;;  %v2163_v16 = vpack.c.bf16 %v2162_v45, %v2162_v45 }
 0x3b6   :  { %v4605_v28 = vsub.f32 %v2065_v39, %v2199_v59  ;;  %v4634_v19 = vsub.f32 %v2047_v15, %v2195_v7 }
 0x3b7   :  { %v2093_v37 = vpop.permute.xlu1 %2092  ;;  %v4614_v43 = vpop.permute.xlu0 %2060  ;;  %v4655_v23 = vunpack.c.l.bf16 %v2163_v16 }
 0x3b8   :  { %v2100_v46 = vsel %vm961_vm5, %v2091_v11, %v2093_v37  ;;  %v2101_v30 = vsel %vm961_vm5, %v2093_v37, %v4540_v20  ;;  %v2066_v33 = vsel %vm871_vm3, %v4536_v27, %v4614_v43 }
 0x3b9   :  { %v4628_v36 = vpack.c.bf16 %v2100_v46, %v2082_v61  ;;  %v4630_v4 = vpack.c.bf16 %v2101_v30, %v2083_v21  ;;  %v4632_v62 = vpack.c.bf16 %v2066_v33, %v2048_v58 }
 0x3bb   :  { %v2202_v18 = vunpack.c.l.bf16 %v4628_v36  ;;  %v2206_v13 = vunpack.c.h.bf16 %v4628_v36  ;;  %v2207_v11 = vunpack.c.h.bf16 %v4630_v4  ;;  %v2196_v54 = vunpack.c.l.bf16 %v4632_v62  ;;  %v2111_v44 = vpop.permute.xlu1 %2110  ;;  %3083 = vmatprep.subr.bf16.mxu0 %v4630_v4  ;;  %v4641_v27 = vpop.permute.xlu0 %2078 }
 0x3bc   :  { %v2200_v2 = vunpack.c.h.bf16 %v4632_v62  ;;  %3085 = vmatpush1.bf16.msra.mxu0 %v4628_v36  ;;  %v2203_v15 = vunpack.c.l.bf16 %v4630_v4  ;;  %v2118_v39 = vsel %vm1006_vm6, %v4550_v35, %v2111_v44  ;;  %v2119_v24 = vsel %vm1006_vm6, %v2111_v44, %v4542_v50 }
 0x3bd   :  { %v4645_v57 = vsub.f32 %v2082_v61, %v2202_v18  ;;  %v4647_v25 = vsub.f32 %v2100_v46, %v2206_v13  ;;  %v4649_v31 = vsub.f32 %v2101_v30, %v2207_v11  ;;  %v4651_v14 = vsub.f32 %v2048_v58, %v2196_v54 }
 0x3be   :  { %v4653_v22 = vsub.f32 %v2066_v33, %v2200_v2  ;;  %v2084_v48 = vsel %vm916_vm4, %v4538_v42, %v4641_v27  ;;  %v4686_v30 = vsub.f32 %v2083_v21, %v2203_v15  ;;  %v4706_v44 = vsub.f32 %v2162_v45, %v4655_v23 }
 0x3bf   :  { %5177 = vst [vmem:[#allocation8_spill] sm:$0xff] %v4651_v14  ;;  %v2129_v32 = vpop.permute.xlu1 %2128  ;;  %v4669_v59 = vpop.permute.xlu0 %2096 }
 0x3c0   :  { %5178 = vst [vmem:[#allocation9_spill] sm:$0xff] %v4653_v22  ;;  %v2136_v37 = vsel %vm1051_vm7, %v4554_v60, %v2129_v32  ;;  %v2137_v7 = vsel %vm1051_vm7, %v2129_v32, %v4544_v3  ;;  %v2102_v35 = vsel %vm961_vm5, %v4540_v20, %v4669_v59 }
 0x3c1   :  { %v4680_v58 = vpack.c.bf16 %v2136_v37, %v2118_v39  ;;  %v4682_v46 = vpack.c.bf16 %v2137_v7, %v2119_v24  ;;  %v4684_v42 = vpack.c.bf16 %v2102_v35, %v2084_v48 }
 0x3c3   :  { %v2210_v33 = vunpack.c.l.bf16 %v4680_v58  ;;  %v2214_v16 = vunpack.c.h.bf16 %v4680_v58  ;;  %v2215_v60 = vunpack.c.h.bf16 %v4682_v46  ;;  %v2204_v18 = vunpack.c.l.bf16 %v4684_v42  ;;  %v2147_v13 = vpop.permute.xlu1 %2146  ;;  %3087 = vmatprep.subr.bf16.mxu0 %v4682_v46  ;;  %v4693_v20 = vpop.permute.xlu0 %2114 }
 0x3c4   :  { %v2208_v11 = vunpack.c.h.bf16 %v4684_v42  ;;  %v4698_v54 = vsel %vm1096_vm8, %v4552_v51, %v2147_v13  ;;  %v4702_v21 = vsel %vm1096_vm8, %v2147_v13, %v4548_v53  ;;  %3089 = vmatpush1.bf16.msra.mxu0 %v4680_v58 }
 0x3c5   :  { %v4708_v2 = vsub.f32 %v2118_v39, %v2210_v33  ;;  %v4710_v15 = vsub.f32 %v2136_v37, %v2214_v16  ;;  %v4712_v32 = vsub.f32 %v2137_v7, %v2215_v60  ;;  %v4714_v61 = vsub.f32 %v2084_v48, %v2204_v18 }
 0x3c6   :  { %v4716_v8 = vsub.f32 %v2102_v35, %v2208_v11  ;;  %v2182_v51 = vpack.c.bf16 %v4698_v54, %v4698_v54  ;;  %v2183_v13 = vpack.c.bf16 %v4702_v21, %v4702_v21  ;;  %v4727_v39 = vsel %vm781_vm1, %v4546_v10, %v4569_v29 }
 0x3c7   :  { %5179 = vst [vmem:[#allocation7_spill] sm:$0xff] %v4714_v61  ;;  %v2027_v37 = vpop.permute.xlu1 %2026  ;;  %v4731_v7 = vpop.permute.xlu0 %2132  ;;  %v2211_v35 = vunpack.c.l.bf16 %v4682_v46  ;;  %v2120_v18 = vsel %vm1006_vm6, %v4542_v50, %v4693_v20  ;;  %v4762_v50 = vpack.c.bf16 %v4727_v39, %v4453_v41 }
 0x3c8   :  { %5180 = vst [vmem:[#allocation6_spill] sm:$0xff] %v4716_v8  ;;  %v4736_v16 = vunpack.c.l.bf16 %v2182_v51  ;;  %v4738_v60 = vunpack.c.l.bf16 %v2183_v13  ;;  %v2031_v10 = vsel %vm781_vm1, %v4569_v29, %v2027_v37  ;;  %v2138_v48 = vsel %vm1051_vm7, %v4544_v3, %v4731_v7 }
 0x3c9   :  { %v4746_v11 = vpack.c.bf16 %v2031_v10, %v4495_v1  ;;  %v4751_v45 = vsub.f32 %v2119_v24, %v2211_v35  ;;  %v4757_v29 = vpack.c.bf16 %v2138_v48, %v2120_v18 }
 0x3ca   :  { %2278 = vmatprep.subr.mxu0 %v4738_v60 }
 0x3cb   :  { %v2193_v37 = vunpack.c.h.bf16 %v4746_v11  ;;  %2279 = vmatpush1.msra.mxu0 %v4736_v16  ;;  %v2045_v3 = vpop.permute.xlu1 %2044  ;;  %v2151_v24 = vpop.permute.xlu0 %2150  ;;  %v2189_v33 = vunpack.c.l.bf16 %v4746_v11  ;;  %v2212_v51 = vunpack.c.l.bf16 %v4757_v29  ;;  %v2216_v13 = vunpack.c.h.bf16 %v4757_v29 }
 0x3cc   :  { %3091 = vmatprep.subr.bf16.mxu0 %v4746_v11  ;;  %v4774_v40 = vsel %vm1096_vm8, %v4548_v53, %v2151_v24  ;;  %2735 = vmatmul.mubr.msk.f32.vlgmr.msra.gmra.mrb[8].mxu0 %vm2258_vm9, %v4706_v44  ;;  %v2049_v14 = vsel %vm826_vm2, %v4596_v56, %v2045_v3 }
 0x3cd   :  { %5181 = vst [vmem:[#allocation4_spill] sm:$0xff] %v4774_v40  ;;  %v4778_v5 = vsub.f32 %v2031_v10, %v2193_v37  ;;  %v2184_v35 = vpack.c.bf16 %v4774_v40, %v4774_v40  ;;  %3093 = vmatpush1.bf16.msra.mxu0 %v4762_v50  ;;  %2397 = vmatprep.mubr.f32.mxu0 %v5126_v47 }
 0x3ce   :  { %v4785_v49 = vsub.f32 %v4495_v1, %v2189_v33  ;;  %v4787_v26 = vsub.f32 %v2120_v18, %v2212_v51  ;;  %v4789_v61 = vsub.f32 %v2138_v48, %v2216_v13 }
 0x3cf   :  { %v4791_v53 = vunpack.c.l.bf16 %v2184_v35  ;;  %v2063_v8 = vpop.permute.xlu1 %2062 }
 0x3d0   :  { %5182 = vst [vmem:[#allocation5_spill] sm:$0xff] %v4787_v26  ;;  %5183 = vst [vmem:[#allocation56_spill] sm:$0xff] %v4789_v61  ;;  %v2067_v1 = vsel %vm871_vm3, %v4614_v43, %v2063_v8 }
 0x3d1   :  { %v2173_v48 = vpack.c.bf16 %v2067_v1, %v2049_v14 }
 0x3d3   :  { %v2201_v18 = vunpack.c.h.bf16 %v2173_v48  ;;  %v2081_v51 = vpop.permute.xlu1 %2080  ;;  %3095 = vmatprep.subr.bf16.mxu0 %v2173_v48  ;;  %v2197_v13 = vunpack.c.l.bf16 %v2173_v48 }
 0x3d4   :  { %3097 = vmatpush1.bf16.msra.mxu0 %v4632_v62  ;;  %v2085_v43 = vsel %vm916_vm4, %v4641_v27, %v2081_v51 }
 0x3d5   :  { %v4804_v35 = vsub.f32 %v2067_v1, %v2201_v18  ;;  %v4806_v10 = vsub.f32 %v2049_v14, %v2197_v13 }
 0x3d7   :  { %v2099_v37 = vpop.permute.xlu1 %2098 }
 0x3d8   :  { %v2103_v8 = vsel %vm961_vm5, %v4669_v59, %v2099_v37 }
 0x3d9   :  { %v2177_v3 = vpack.c.bf16 %v2103_v8, %v2085_v43 }
 0x3db   :  { %v2209_v33 = vunpack.c.h.bf16 %v2177_v3  ;;  %v2117_v40 = vpop.permute.xlu1 %2116  ;;  %3099 = vmatprep.subr.bf16.mxu0 %v2177_v3  ;;  %v2205_v26 = vunpack.c.l.bf16 %v2177_v3 }
 0x3dc   :  { %3101 = vmatpush1.bf16.msra.mxu0 %v4684_v42  ;;  %v2121_v27 = vsel %vm1006_vm6, %v4693_v20, %v2117_v40  ;;  %v2192_v40 = vunpack.c.h.bf16 %v4762_v50 }
 0x3dd   :  { %v4815_v1 = vsub.f32 %v2103_v8, %v2209_v33  ;;  %v4817_v14 = vsub.f32 %v2085_v43, %v2205_v26 }
 0x3df   :  { %5184 = vst [vmem:[#allocation13_spill] sm:$0xff] %v4817_v14  ;;  %v2135_v18 = vpop.permute.xlu1 %2134 }
 0x3e0   :  { %v2139_v59 = vsel %vm1051_vm7, %v4731_v7, %v2135_v18 }
 0x3e1   :  { %v2181_v37 = vpack.c.bf16 %v2139_v59, %v2121_v27 }
 0x3e3   :  { %v2217_v51 = vunpack.c.h.bf16 %v2181_v37  ;;  %v2153_v56 = vpop.permute.xlu1 %2152  ;;  %3103 = vmatprep.subr.bf16.mxu0 %v2181_v37  ;;  %v2213_v61 = vunpack.c.l.bf16 %v2181_v37 }
 0x3e4   :  { %v2157_v33 = vsel %vm1096_vm8, %v2151_v24, %v2153_v56  ;;  %3105 = vmatpush1.bf16.msra.mxu0 %v4757_v29 }
 0x3e5   :  { %v2253_v26 = vsub.f32 %v2139_v59, %v2217_v51  ;;  %v2185_v43 = vpack.c.bf16 %v2157_v33, %v2157_v33  ;;  %v2249_v8 = vsub.f32 %v2121_v27, %v2213_v61 }
 0x3e7   :  { %v2221_v22 = vunpack.c.l.bf16 %v2185_v43  ;;  %v3166_v13 = vpack.c.bf16 %v2253_v26, %v2249_v8 }
 0x3e9   :  { %v2257_v14 = vsub.f32 %v2157_v33, %v2221_v22  ;;  %2349 = vmatprep.subr.mxu0 %v2221_v22 }
 0x3ea   :  { %2350 = vmatpush1.msra.mxu0 %v4791_v53 }
 0x3eb   :  { %3107 = vmatprep.subr.bf16.mxu0 %v4563_v38  ;;  %2736 = vmatmul.mubr.msk.f32.vlgmr.msra.gmra.mrb[10].mxu0 %vm2258_vm9, %v4706_v44  ;;  %v5186_v38 = vpack.c.bf16 %v4581_v9, %v4579_v63  ;;  %v5190_v63 = vpack.c.bf16 %v4647_v25, %v4645_v57  ;;  %v5191_v9 = vpack.c.bf16 %v4712_v32, %v4751_v45  ;;  %v5197_v57 = vld [vmem:[#allocation9_spill] sm:$0xff]  ;;  %v5198_v25 = vld [vmem:[#allocation8_spill] sm:$0xff] }
 0x3ec   :  { %3109 = vmatpush1.bf16.msra.mxu0 %v4560_v52  ;;  %2471 = vmatprep.mubr.f32.mxu0 %v5126_v47  ;;  %v5185_v52 = vpack.c.bf16 %v4583_v12, %v4590_v34  ;;  %v5189_v12 = vpack.c.bf16 %v4649_v31, %v4686_v30  ;;  %v2188_v34 = vunpack.c.l.bf16 %v4762_v50  ;;  %v5199_v31 = vpack.c.bf16 %v5197_v57, %v5198_v25  ;;  %v5208_v30 = vld [vmem:[#allocation4_spill] sm:$0xff] }
 0x3ed   :  { %3111 = vmatprep.subr.bf16.mxu0 %v4587_v0  ;;  %v5188_v0 = vpack.c.bf16 %v4602_v55, %v4600_v6  ;;  %v2228_v6 = vsub.f32 %v4727_v39, %v2192_v40  ;;  %v5192_v55 = vpack.c.bf16 %v4710_v15, %v4708_v2  ;;  %v5209_v20 = vsub.f32 %v5208_v30, %v4791_v53 }
 0x3f0   :  { %3113 = vmatpush1.bf16.msra.mxu0 %v4585_v17  ;;  %v5187_v17 = vpack.c.bf16 %v4605_v28, %v4634_v19  ;;  %v2224_v28 = vsub.f32 %v4453_v41, %v2188_v34  ;;  %v5195_v41 = vpack.c.bf16 %v4778_v5, %v4785_v49  ;;  %v5196_v19 = vpack.c.bf16 %v4804_v35, %v4806_v10  ;;  %v5205_v49 = vld [vmem:[#allocation56_spill] sm:$0xff]  ;;  %v5206_v5 = vld [vmem:[#allocation5_spill] sm:$0xff] }
 0x3f1   :  { %3115 = vmatprep.subr.bf16.mxu0 %v4630_v4 }
 0x3f2   :  { %v3156_v4 = vpack.c.bf16 %v2228_v6, %v2224_v28 }
 0x3f4   :  { %3117 = vmatpush1.bf16.msra.mxu0 %v4628_v36  ;;  %v5193_v36 = vsub.f32 %v4702_v21, %v4738_v60 }
 0x3f5   :  { %3119 = vmatprep.subr.bf16.mxu0 %v4682_v46  ;;  %v5203_v46 = vld [vmem:[#allocation7_spill] sm:$0xff] }
 0x3f8   :  { %3121 = vmatpush1.bf16.msra.mxu0 %v4680_v58  ;;  %v5202_v58 = vld [vmem:[#allocation6_spill] sm:$0xff] }
 0x3f9   :  { %2423 = vmatprep.subr.mxu0 %v4738_v60 }
 0x3fc   :  { %2424 = vmatpush1.msra.mxu0 %v4736_v16 }
 0x3fd   :  { %3123 = vmatprep.subr.bf16.mxu0 %v4746_v11  ;;  %2737 = vmatmul.mubr.msk.f32.vlgmr.msra.gmra.mrb[8].mxu0 %vm2258_vm9, %v4655_v23 }
 0x3fe   :  { %3125 = vmatpush1.bf16.msra.mxu0 %v4762_v50  ;;  %2542 = vmatprep.mubr.f32.mxu0 %v5126_v47 }
 0x3ff   :  { %3127 = vmatprep.subr.bf16.mxu0 %v2173_v48 }
 0x402   :  { %3129 = vmatpush1.bf16.msra.mxu0 %v4632_v62  ;;  %v5194_v62 = vsub.f32 %v4698_v54, %v4736_v16  ;;  %v2699_v54 = vpop.permute.xlu0 %2698 }
 0x403   :  { %3131 = vmatprep.subr.bf16.mxu0 %v2177_v3 }
 0x406   :  { %3133 = vmatpush1.bf16.msra.mxu0 %v4684_v42  ;;  %v5204_v42 = vpack.c.bf16 %v5202_v58, %v5203_v46 }
 0x407   :  { %3135 = vmatprep.subr.bf16.mxu0 %v2181_v37 }
 0x40a   :  { %3137 = vmatpush1.bf16.msra.mxu0 %v4757_v29 }
 0x40b   :  { %2494 = vmatprep.subr.mxu0 %v2221_v22  ;;  %v5200_v22 = vld [vmem:[#allocation13_spill] sm:$0xff] }
 0x40c   :  { %v5201_v61 = vpack.c.bf16 %v4815_v1, %v5200_v22 }
 0x40e   :  { %2495 = vmatpush1.msra.mxu0 %v4791_v53 }
 0x40f   :  { %3139 = vmatprep.subr.bf16.mxu0 %v5185_v52  ;;  %2738 = vmatmul.mubr.msk.f32.vlgmr.msra.gmra.mrb[10].mxu0 %vm2258_vm9, %v4655_v23 }
 0x410   :  { %3141 = vmatpush1.bf16.msra.mxu0 %v5186_v38  ;;  %2613 = vmatprep.mubr.f32.mxu0 %v5126_v47 }
 0x411   :  { %3143 = vmatprep.subr.bf16.mxu0 %v5187_v17 }
 0x414   :  { %3145 = vmatpush1.bf16.msra.mxu0 %v5188_v0 }
 0x415   :  { %3147 = vmatprep.subr.bf16.mxu0 %v5189_v12 }
 0x418   :  { %3149 = vmatpush1.bf16.msra.mxu0 %v5190_v63 }
 0x419   :  { %3151 = vmatprep.subr.bf16.mxu0 %v5191_v9 }
 0x41c   :  { %3153 = vmatpush1.bf16.msra.mxu0 %v5192_v55 }
 0x41d   :  { %2565 = vmatprep.subr.mxu0 %v5193_v36 }
 0x420   :  { %2566 = vmatpush1.msra.mxu0 %v5194_v62 }
 0x421   :  { %2739 = vmatmul.mubr.msk.f32.vlgmr.msra.gmra.mrb[8].mxu0 %vm2258_vm9, %v4655_v23  ;;  %3155 = vmatprep.subr.bf16.mxu0 %v5195_v41 }
 0x422   :  { %3157 = vmatpush1.bf16.msra.mxu0 %v3156_v4  ;;  %2684 = vmatprep.mubr.f32.mxu0 %v5126_v47  ;;  %v5207_v47 = vpack.c.bf16 %v5205_v49, %v5206_v5 }
 0x423   :  { %3159 = vmatprep.subr.bf16.mxu0 %v5196_v19 }
 0x426   :  { %3161 = vmatpush1.bf16.msra.mxu0 %v5199_v31 }
 0x427   :  { %3163 = vmatprep.subr.bf16.mxu0 %v5201_v61 }
 0x42a   :  { %3165 = vmatpush1.bf16.msra.mxu0 %v5204_v42 }
 0x42b   :  { %3167 = vmatprep.subr.bf16.mxu0 %v3166_v13 }
 0x42e   :  { %3169 = vmatpush1.bf16.msra.mxu0 %v5207_v47 }
 0x42f   :  { %2636 = vmatprep.subr.mxu0 %v2257_v14 }
 0x432   :  { %2637 = vmatpush1.msra.mxu0 %v5209_v20 }
 0x433   :  { %2740 = vmatmul.mubr.msk.f32.vlgmr.msra.gmra.mrb[10].mxu0 %vm2258_vm9, %v4655_v23 }
 0x4f4   :  { %v2615_v21 = vpop.f32.mrb[8].mxu0 }
 0x4f5   :  { %v2701_v44 = vadd.f32 %v2699_v54, %v2615_v21  ;;  %v2617_v2 = vpop.f32.mrb[9].mxu0 }
 0x4f6   :  { %v2702_v15 = vadd.f32 %v2699_v54, %v2617_v2 }
 0x4f7   :  { %v2705_v32 = vmax.f32 %v2701_v44, 0.0 }
 0x4f8   :  { %v2706_v45 = vmax.f32 %v2702_v15, 0.0 }
 0x4f9   :  { %2709 = vst [vmem:[%s4933_s8] sm:$0xff] %v2705_v32 }
 0x4fa   :  { %2710 = vst [vmem:[%s4933_s8 + $0x8] sm:$0xff] %v2706_v45 }
 0x506   :  { %v2686_v39 = vpop.f32.mrb[10].mxu0 }
 0x507   :  { %v2703_v7 = vadd.f32 %v2699_v54, %v2686_v39  ;;  %v2688_v16 = vpop.f32.mrb[11].mxu0 }
 0x508   :  { %v2704_v60 = vadd.f32 %v2699_v54, %v2688_v16 }
 0x509   :  { %v2707_v23 = vmax.f32 %v2703_v7, 0.0 }
 0x50a   :  { %v2708_v11 = vmax.f32 %v2704_v60, 0.0 }
 0x50b   :  { %2711 = vst [vmem:[%s4933_s8 + $0x10] sm:$0xff] %v2707_v23 }
 0x50c   :  { %2712 = vst [vmem:[%s4933_s8 + $0x18] sm:$0xff] %v2708_v11 }

</bundles_post_ra>
